<compile_context>
chip_gen: v7x
topology: tpu7x:2x2x1
jax: 0.10.0
libtpu: 0.0.40
codegen_flags: <defaults>
</compile_context>

<pallas_src>
import functools

import jax
import jax.numpy as jnp
from jax import lax
from jax.experimental import pallas as pl
from jax.experimental.pallas import tpu as pltpu


# ------------------------------------------------------------------
# Pallas kernel: fused fwd+bwd LSTM recurrence over pre-computed gates.
# grid = (Tp // tk,); packed (h, c) carries [Bp, 2H] live in VMEM scratch.
# Column layout everywhere: first H columns = forward dir, next H = backward dir
# (backward runs in wrapper-reversed time, so both directions stream forward here).
# ------------------------------------------------------------------
def _bilstm_recurrence_kernel(pg_ref, whh_ref, y_ref, h_ref, c_ref,
                              *, hidden, tk, unroll):
    t = pl.program_id(0)

    @pl.when(t == 0)
    def _():
        h_ref[...] = jnp.zeros_like(h_ref)
        c_ref[...] = jnp.zeros_like(c_ref)

    H2 = 2 * hidden
    whh = whh_ref[...]            # [2H, 8H] block-diagonal, gate-interleaved columns

    def body(j, carry):
        h_prev = h_ref[...]       # [Bp, 2H] = [h_f | h_b]
        c_prev = c_ref[...]       # [Bp, 2H] = [c_f | c_b]
        # pre-gates already contain x @ W_ih^T + (b_ih + b_hh), hoisted to XLA.
        gates = pg_ref[j] + jnp.dot(h_prev, whh,
                                    preferred_element_type=jnp.float32)
        # columns: [i_f i_b | f_f f_b | g_f g_b | o_f o_b], each block 2H wide
        i_g = jax.nn.sigmoid(gates[:, 0 * H2:1 * H2])
        f_g = jax.nn.sigmoid(gates[:, 1 * H2:2 * H2])
        g_g = jnp.tanh(gates[:, 2 * H2:3 * H2])
        o_g = jax.nn.sigmoid(gates[:, 3 * H2:4 * H2])
        c_new = f_g * c_prev + i_g * g_g
        h_new = o_g * jnp.tanh(c_new)
        h_ref[...] = h_new
        c_ref[...] = c_new
        y_ref[j] = h_new          # lane-dense 2H-wide store
        return carry

    lax.fori_loop(0, tk, body, 0, unroll=unroll)


# ------------------------------------------------------------------
# Weight / bias repacking (trace-time, tiny arrays)
# ------------------------------------------------------------------
def _pack_wih(w_f, w_b, H):
    """PyTorch w_ih (4H, D) x2 -> [D, 8H], columns [i_f i_b f_f f_b g_f g_b o_f o_b]."""
    cols = []
    for k in range(4):
        cols.append(w_f[k * H:(k + 1) * H, :].T)
        cols.append(w_b[k * H:(k + 1) * H, :].T)
    return jnp.concatenate(cols, axis=1)


def _pack_bias(b_f, b_b, H):
    segs = []
    for k in range(4):
        segs.append(b_f[k * H:(k + 1) * H])
        segs.append(b_b[k * H:(k + 1) * H])
    return jnp.concatenate(segs)


def _pack_whh_blockdiag(w_f, w_b, H):
    """PyTorch w_hh (4H, H) x2 -> block-diagonal [2H, 8H] with interleaved gate cols."""
    zeros = jnp.zeros((H, H), jnp.float32)
    cols = []
    for k in range(4):
        cols.append(jnp.concatenate([w_f[k * H:(k + 1) * H, :].T, zeros], axis=0))
        cols.append(jnp.concatenate([zeros, w_b[k * H:(k + 1) * H, :].T], axis=0))
    return jnp.concatenate(cols, axis=1)   # [2H, 8H]


def _choose_time_block(T, Bp, H, vmem_budget_bytes):
    """Largest tk whose double-buffered in/out blocks + weights fit the budget."""
    bytes_f32 = 4
    per_tk = 2 * Bp * (8 * H + 2 * H) * bytes_f32               # 2 bufs of in+out rows
    fixed = (2 * (2 * H) * (8 * H) * bytes_f32                  # W_hh (double-buffered)
             + 2 * Bp * (2 * H) * bytes_f32                     # h/c scratch
             + (1 << 20))                                       # margin
    tk = (vmem_budget_bytes - fixed) // per_tk
    tk = int(max(1, min(tk, 256, T)))
    return tk


# ------------------------------------------------------------------
# One bidirectional LSTM layer
# ------------------------------------------------------------------
def _run_bilstm_layer(x_tm, layer_params, *, vmem_budget_bytes=24 * 1024 * 1024):
    """x_tm: [T, B, D] time-major f32. Returns [T, B, 2H] (fwd ++ bwd)."""
    T, B, D = x_tm.shape
    H = layer_params["fwd"]["w_hh"].shape[1]          # PyTorch w_hh: (4H, H)

    # ---- hoisted, fused input projection (default MXU precision) ----
    w_ih_packed = _pack_wih(layer_params["fwd"]["w_ih"],
                            layer_params["bwd"]["w_ih"], H)       # [D, 8H]
    b_packed = _pack_bias(layer_params["fwd"]["b"],
                          layer_params["bwd"]["b"], H)            # [8H]
    pg = jnp.dot(x_tm.reshape(T * B, D), w_ih_packed) + b_packed
    pg = pg.reshape(T, B, 8 * H)

    # ---- reverse the backward-direction columns in time (wrapper-side plumbing) ----
    col_is_bwd = jnp.tile(
        jnp.concatenate([jnp.zeros((H,), bool), jnp.ones((H,), bool)]), 4)   # [8H]
    pg_packed = jnp.where(col_is_bwd[None, None, :], pg[::-1], pg)

    # ---- batch padding (f32 sublane) and time padding (to a multiple of tk) ----
    Bp = ((B + 7) // 8) * 8
    tk = _choose_time_block(T, Bp, H, vmem_budget_bytes)
    nT = (T + tk - 1) // tk
    Tp = nT * tk
    if Tp != T or Bp != B:
        # Padded rows/timesteps have zero pre-gates + zero state -> h stays 0; the
        # padded timesteps sit after all real steps for BOTH directions, so they are
        # dropped without affecting the kept outputs.
        pg_packed = jnp.pad(pg_packed, ((0, Tp - T), (0, Bp - B), (0, 0)))

    whh_packed = _pack_whh_blockdiag(layer_params["fwd"]["w_hh"],
                                     layer_params["bwd"]["w_hh"], H)   # [2H, 8H]

    unroll = int(min(tk, 8))
    kernel = functools.partial(_bilstm_recurrence_kernel,
                               hidden=H, tk=tk, unroll=unroll)

    bytes_f32 = 4
    vmem_need = (2 * tk * Bp * (8 * H + 2 * H) * bytes_f32
                 + 2 * (2 * H) * (8 * H) * bytes_f32
                 + 2 * Bp * (2 * H) * bytes_f32)
    vmem_limit = int(min(max(32 * 1024 * 1024, vmem_need + (4 << 20)),
                         64 * 1024 * 1024))   # stay within v7x physical VMEM

    # TODO(synk): single-buffer the constant W_hh block (pipeline_mode=pl.Buffered(1))
    #             to free VMEM headroom for even larger tk at big H.
    y_packed = pl.pallas_call(
        kernel,
        out_shape=jax.ShapeDtypeStruct((Tp, Bp, 2 * H), jnp.float32),
        grid_spec=pltpu.PrefetchScalarGridSpec(
            num_scalar_prefetch=0,
            grid=(nT,),
            in_specs=[
                pl.BlockSpec((tk, Bp, 8 * H), lambda t: (t, 0, 0)),   # packed pre-gates
                pl.BlockSpec((2 * H, 8 * H), lambda t: (0, 0)),       # block-diag W_hh
            ],
            out_specs=pl.BlockSpec((tk, Bp, 2 * H), lambda t: (t, 0, 0)),
            scratch_shapes=[
                pltpu.VMEM((Bp, 2 * H), jnp.float32),   # h carry [h_f | h_b]
                pltpu.VMEM((Bp, 2 * H), jnp.float32),   # c carry [c_f | c_b]
            ],
        ),
        compiler_params=pltpu.CompilerParams(
            dimension_semantics=("arbitrary",),          # time is a serial recurrence
            vmem_limit_bytes=vmem_limit,
        ),
    )(pg_packed, whh_packed)

    y_f = y_packed[:T, :B, :H]                    # forward time order
    y_b = y_packed[:T, :B, H:][::-1]              # undo wrapper time reversal
    return jnp.concatenate([y_f, y_b], axis=-1)   # [T, B, 2H]


# ------------------------------------------------------------------
# StackedBRNN wrapper (glue in plain JAX)
# ------------------------------------------------------------------
def init_stacked_brnn_params(key, input_size, hidden_size, num_layers):
    """PyTorch-style nn.LSTM parameter shapes, deterministic uniform init."""
    params = []
    for layer in range(num_layers):
        d_in = input_size if layer == 0 else 2 * hidden_size
        bound = 1.0 / (hidden_size ** 0.5)
        layer_p = {}
        for direction in ("fwd", "bwd"):
            key, k1, k2, k3, k4 = jax.random.split(key, 5)
            layer_p[direction] = {
                "w_ih": jax.random.uniform(k1, (4 * hidden_size, d_in),
                                           jnp.float32, -bound, bound),
                "w_hh": jax.random.uniform(k2, (4 * hidden_size, hidden_size),
                                           jnp.float32, -bound, bound),
                # combined b_ih + b_hh
                "b": (jax.random.uniform(k3, (4 * hidden_size,), jnp.float32, -bound, bound)
                      + jax.random.uniform(k4, (4 * hidden_size,), jnp.float32, -bound, bound)),
            }
        params.append(layer_p)
    return params


def stacked_brnn_forward(x, params, *, concat_layers=False, do_residual=False):
    """x: [B, T, D_in] batch-first (PyTorch layout). Returns [B, T, 2H] (or concat)."""
    x_tm = jnp.transpose(x, (1, 0, 2)).astype(jnp.float32)   # [T, B, D]
    hiddens = []
    cur = x_tm
    for i, lp in enumerate(params):
        out = _run_bilstm_layer(cur, lp)
        if do_residual and i > 0:
            out = out + cur
        hiddens.append(out)
        cur = out
    result = jnp.concatenate(hiddens, axis=-1) if concat_layers else hiddens[-1]
    return jnp.transpose(result, (1, 0, 2))                   # [B, T, *]


# ------------------------------------------------------------------
# Pure-JAX reference (lax.scan LSTM) to validate the Pallas kernel.
# Uses default matmul precision to match the kernel's MXU precision.
# ------------------------------------------------------------------
def _ref_lstm_dir(x_tm, w_ih, w_hh, b, reverse):
    T, B, D = x_tm.shape
    H = w_hh.shape[1]
    xs = x_tm[::-1] if reverse else x_tm

    def step(carry, x_t):
        h, c = carry
        gates = jnp.dot(x_t, w_ih.T) + jnp.dot(h, w_hh.T) + b
        i = jax.nn.sigmoid(gates[:, 0 * H:1 * H])
        f = jax.nn.sigmoid(gates[:, 1 * H:2 * H])
        g = jnp.tanh(gates[:, 2 * H:3 * H])
        o = jax.nn.sigmoid(gates[:, 3 * H:4 * H])
        c = f * c + i * g
        h = o * jnp.tanh(c)
        return (h, c), h

    h0 = jnp.zeros((B, H), jnp.float32)
    _, ys = lax.scan(step, (h0, h0), xs)
    return ys[::-1] if reverse else ys


def stacked_brnn_reference(x, params):
    cur = jnp.transpose(x, (1, 0, 2)).astype(jnp.float32)
    for lp in params:
        y_f = _ref_lstm_dir(cur, lp["fwd"]["w_ih"], lp["fwd"]["w_hh"], lp["fwd"]["b"], False)
        y_b = _ref_lstm_dir(cur, lp["bwd"]["w_ih"], lp["bwd"]["w_hh"], lp["bwd"]["b"], True)
        cur = jnp.concatenate([y_f, y_b], axis=-1)
    return jnp.transpose(cur, (1, 0, 2))


if __name__ == "__main__":
    B, T, D_IN, H, NUM_LAYERS = 2, 8, 16, 32, 2

    key = jax.random.PRNGKey(0)
    kx, kp = jax.random.split(key)
    x = jax.random.normal(kx, (B, T, D_IN), jnp.float32)
    params = init_stacked_brnn_params(kp, D_IN, H, NUM_LAYERS)

    out = jax.block_until_ready(stacked_brnn_forward(x, params))
    assert out.shape == (B, T, 2 * H), out.shape

    ref = jax.block_until_ready(stacked_brnn_reference(x, params))
    max_err = float(jnp.max(jnp.abs(out - ref)))
    assert jnp.allclose(out, ref, atol=1e-2, rtol=1e-2), max_err

    print("KERNEL_OK")
</pallas_src>

<mosaic_0001>
module attributes {stable_mosaic.version = 11 : i64} {
  func.func @_bilstm_recurrence_kernel(%arg0: i32, %arg1: memref<8x8x256xf32, #tpu.memory_space<vmem>>, %arg2: memref<64x256xf32, #tpu.memory_space<vmem>>, %arg3: memref<8x8x64xf32, #tpu.memory_space<vmem>>, %arg4: memref<8x64xf32, #tpu.memory_space<vmem>>, %arg5: memref<8x64xf32, #tpu.memory_space<vmem>>) attributes {dimension_semantics = [#tpu.dimension_semantics<arbitrary>], iteration_bounds = array<i64: 1>, scalar_prefetch = 0 : i64, scratch_operands = 2 : i64, tpu.core_type = #tpu.core_type<tc>, window_params = [{transform_indices = @transform_0, window_bounds = array<i64: 8, 8, 256>}, {pipeline_mode = #tpu.pipeline_mode<synchronous>, transform_indices = @transform_1, window_bounds = array<i64: 64, 256>}, {transform_indices = @transform_2, window_bounds = array<i64: 8, 8, 64>}]} {
    %c0_i32 = arith.constant 0 : i32
    %0 = arith.cmpi eq, %arg0, %c0_i32 : i32
    %1 = arith.extui %0 : i1 to i32
    %c0_i32_0 = arith.constant 0 : i32
    %2 = arith.cmpi ne, %1, %c0_i32_0 : i32
    scf.if %2 {
      %cst_130 = arith.constant 0.000000e+00 : f32
      %308 = vector.broadcast %cst_130 : f32 to vector<8x64xf32>
      %c0_131 = arith.constant 0 : index
      %c0_132 = arith.constant 0 : index
      %309 = vector.load %arg4[%c0_131, %c0_132] : memref<8x64xf32, #tpu.memory_space<vmem>>, vector<8x64xf32>
      tpu.vector_store %arg4[%c0_131, %c0_132], %308 {strides = array<i32>} : memref<8x64xf32, #tpu.memory_space<vmem>>, vector<8x64xf32>,
      %cst_133 = arith.constant 0.000000e+00 : f32
      %310 = vector.broadcast %cst_133 : f32 to vector<8x64xf32>
      %c0_134 = arith.constant 0 : index
      %c0_135 = arith.constant 0 : index
      %311 = vector.load %arg5[%c0_134, %c0_135] : memref<8x64xf32, #tpu.memory_space<vmem>>, vector<8x64xf32>
      tpu.vector_store %arg5[%c0_134, %c0_135], %310 {strides = array<i32>} : memref<8x64xf32, #tpu.memory_space<vmem>>, vector<8x64xf32>,
    } else {
    }
    %c0 = arith.constant 0 : index
    %c0_1 = arith.constant 0 : index
    %3 = vector.load %arg2[%c0, %c0_1] : memref<64x256xf32, #tpu.memory_space<vmem>>, vector<64x256xf32>
    %c0_i32_2 = arith.constant 0 : i32
    %c0_3 = arith.constant 0 : index
    %c0_4 = arith.constant 0 : index
    %4 = vector.load %arg4[%c0_3, %c0_4] : memref<8x64xf32, #tpu.memory_space<vmem>>, vector<8x64xf32>
    %c0_5 = arith.constant 0 : index
    %c0_6 = arith.constant 0 : index
    %5 = vector.load %arg5[%c0_5, %c0_6] : memref<8x64xf32, #tpu.memory_space<vmem>>, vector<8x64xf32>
    %6 = arith.index_cast %c0_i32_2 : i32 to index
    %c0_7 = arith.constant 0 : index
    %c0_8 = arith.constant 0 : index
    %7 = vector.load %arg1[%6, %c0_7, %c0_8] : memref<8x8x256xf32, #tpu.memory_space<vmem>>, vector<1x8x256xf32>
    %8 = vector.shape_cast %7 : vector<1x8x256xf32> to vector<8x256xf32>
    %cst = arith.constant dense<0.000000e+00> : vector<8x256xf32>
    %9 = tpu.matmul %4, %3, %cst {dimension_numbers = #tpu.dot_dimension_numbers<[1], [0], [0], [1], [0, 0, 1, 1], [], []>} : vector<8x64xf32>, vector<64x256xf32>, vector<8x256xf32> -> vector<8x256xf32>
    %10 = arith.addf %8, %9 : vector<8x256xf32>
    %11 = vector.extract_strided_slice %10 {offsets = [0, 0], sizes = [8, 64], strides = [1, 1]} : vector<8x256xf32> to vector<8x64xf32>
    %12 = arith.negf %11 : vector<8x64xf32>
    %13 = math.exp %12 : vector<8x64xf32>
    %cst_9 = arith.constant 1.000000e+00 : f32
    %14 = vector.broadcast %cst_9 : f32 to vector<8x64xf32>
    %15 = arith.addf %14, %13 : vector<8x64xf32>
    %16 = arith.divf %14, %15 : vector<8x64xf32>
    %17 = vector.extract_strided_slice %10 {offsets = [0, 64], sizes = [8, 64], strides = [1, 1]} : vector<8x256xf32> to vector<8x64xf32>
    %18 = arith.negf %17 : vector<8x64xf32>
    %19 = math.exp %18 : vector<8x64xf32>
    %cst_10 = arith.constant 1.000000e+00 : f32
    %20 = vector.broadcast %cst_10 : f32 to vector<8x64xf32>
    %21 = arith.addf %20, %19 : vector<8x64xf32>
    %22 = arith.divf %20, %21 : vector<8x64xf32>
    %23 = vector.extract_strided_slice %10 {offsets = [0, 128], sizes = [8, 64], strides = [1, 1]} : vector<8x256xf32> to vector<8x64xf32>
    %24 = math.tanh %23 : vector<8x64xf32>
    %25 = vector.extract_strided_slice %10 {offsets = [0, 192], sizes = [8, 64], strides = [1, 1]} : vector<8x256xf32> to vector<8x64xf32>
    %26 = arith.negf %25 : vector<8x64xf32>
    %27 = math.exp %26 : vector<8x64xf32>
    %cst_11 = arith.constant 1.000000e+00 : f32
    %28 = vector.broadcast %cst_11 : f32 to vector<8x64xf32>
    %29 = arith.addf %28, %27 : vector<8x64xf32>
    %30 = arith.divf %28, %29 : vector<8x64xf32>
    %31 = arith.mulf %22, %5 : vector<8x64xf32>
    %32 = arith.mulf %16, %24 : vector<8x64xf32>
    %33 = arith.addf %31, %32 : vector<8x64xf32>
    %34 = math.tanh %33 : vector<8x64xf32>
    %35 = arith.mulf %30, %34 : vector<8x64xf32>
    %c0_12 = arith.constant 0 : index
    %c0_13 = arith.constant 0 : index
    %36 = vector.load %arg4[%c0_12, %c0_13] : memref<8x64xf32, #tpu.memory_space<vmem>>, vector<8x64xf32>
    tpu.vector_store %arg4[%c0_12, %c0_13], %35 {strides = array<i32>} : memref<8x64xf32, #tpu.memory_space<vmem>>, vector<8x64xf32>,
    %c0_14 = arith.constant 0 : index
    %c0_15 = arith.constant 0 : index
    %37 = vector.load %arg5[%c0_14, %c0_15] : memref<8x64xf32, #tpu.memory_space<vmem>>, vector<8x64xf32>
    tpu.vector_store %arg5[%c0_14, %c0_15], %33 {strides = array<i32>} : memref<8x64xf32, #tpu.memory_space<vmem>>, vector<8x64xf32>,
    %38 = arith.index_cast %c0_i32_2 : i32 to index
    %c0_16 = arith.constant 0 : index
    %c0_17 = arith.constant 0 : index
    %39 = vector.load %arg3[%38, %c0_16, %c0_17] : memref<8x8x64xf32, #tpu.memory_space<vmem>>, vector<1x8x64xf32>
    %40 = vector.shape_cast %39 : vector<1x8x64xf32> to vector<8x64xf32>
    %41 = vector.shape_cast %35 : vector<8x64xf32> to vector<1x8x64xf32>
    tpu.vector_store %arg3[%38, %c0_16, %c0_17], %41 {strides = array<i32>} : memref<8x8x64xf32, #tpu.memory_space<vmem>>, vector<1x8x64xf32>,
    %c1_i32 = arith.constant 1 : i32
    %c0_18 = arith.constant 0 : index
    %c0_19 = arith.constant 0 : index
    %42 = vector.load %arg4[%c0_18, %c0_19] : memref<8x64xf32, #tpu.memory_space<vmem>>, vector<8x64xf32>
    %c0_20 = arith.constant 0 : index
    %c0_21 = arith.constant 0 : index
    %43 = vector.load %arg5[%c0_20, %c0_21] : memref<8x64xf32, #tpu.memory_space<vmem>>, vector<8x64xf32>
    %44 = arith.index_cast %c1_i32 : i32 to index
    %c0_22 = arith.constant 0 : index
    %c0_23 = arith.constant 0 : index
    %45 = vector.load %arg1[%44, %c0_22, %c0_23] : memref<8x8x256xf32, #tpu.memory_space<vmem>>, vector<1x8x256xf32>
    %46 = vector.shape_cast %45 : vector<1x8x256xf32> to vector<8x256xf32>
    %cst_24 = arith.constant dense<0.000000e+00> : vector<8x256xf32>
    %47 = tpu.matmul %42, %3, %cst_24 {dimension_numbers = #tpu.dot_dimension_numbers<[1], [0], [0], [1], [0, 0, 1, 1], [], []>} : vector<8x64xf32>, vector<64x256xf32>, vector<8x256xf32> -> vector<8x256xf32>
    %48 = arith.addf %46, %47 : vector<8x256xf32>
    %49 = vector.extract_strided_slice %48 {offsets = [0, 0], sizes = [8, 64], strides = [1, 1]} : vector<8x256xf32> to vector<8x64xf32>
    %50 = arith.negf %49 : vector<8x64xf32>
    %51 = math.exp %50 : vector<8x64xf32>
    %cst_25 = arith.constant 1.000000e+00 : f32
    %52 = vector.broadcast %cst_25 : f32 to vector<8x64xf32>
    %53 = arith.addf %52, %51 : vector<8x64xf32>
    %54 = arith.divf %52, %53 : vector<8x64xf32>
    %55 = vector.extract_strided_slice %48 {offsets = [0, 64], sizes = [8, 64], strides = [1, 1]} : vector<8x256xf32> to vector<8x64xf32>
    %56 = arith.negf %55 : vector<8x64xf32>
    %57 = math.exp %56 : vector<8x64xf32>
    %cst_26 = arith.constant 1.000000e+00 : f32
    %58 = vector.broadcast %cst_26 : f32 to vector<8x64xf32>
    %59 = arith.addf %58, %57 : vector<8x64xf32>
    %60 = arith.divf %58, %59 : vector<8x64xf32>
    %61 = vector.extract_strided_slice %48 {offsets = [0, 128], sizes = [8, 64], strides = [1, 1]} : vector<8x256xf32> to vector<8x64xf32>
    %62 = math.tanh %61 : vector<8x64xf32>
    %63 = vector.extract_strided_slice %48 {offsets = [0, 192], sizes = [8, 64], strides = [1, 1]} : vector<8x256xf32> to vector<8x64xf32>
    %64 = arith.negf %63 : vector<8x64xf32>
    %65 = math.exp %64 : vector<8x64xf32>
    %cst_27 = arith.constant 1.000000e+00 : f32
    %66 = vector.broadcast %cst_27 : f32 to vector<8x64xf32>
    %67 = arith.addf %66, %65 : vector<8x64xf32>
    %68 = arith.divf %66, %67 : vector<8x64xf32>
    %69 = arith.mulf %60, %43 : vector<8x64xf32>
    %70 = arith.mulf %54, %62 : vector<8x64xf32>
    %71 = arith.addf %69, %70 : vector<8x64xf32>
    %72 = math.tanh %71 : vector<8x64xf32>
    %73 = arith.mulf %68, %72 : vector<8x64xf32>
    %c0_28 = arith.constant 0 : index
    %c0_29 = arith.constant 0 : index
    %74 = vector.load %arg4[%c0_28, %c0_29] : memref<8x64xf32, #tpu.memory_space<vmem>>, vector<8x64xf32>
    tpu.vector_store %arg4[%c0_28, %c0_29], %73 {strides = array<i32>} : memref<8x64xf32, #tpu.memory_space<vmem>>, vector<8x64xf32>,
    %c0_30 = arith.constant 0 : index
    %c0_31 = arith.constant 0 : index
    %75 = vector.load %arg5[%c0_30, %c0_31] : memref<8x64xf32, #tpu.memory_space<vmem>>, vector<8x64xf32>
    tpu.vector_store %arg5[%c0_30, %c0_31], %71 {strides = array<i32>} : memref<8x64xf32, #tpu.memory_space<vmem>>, vector<8x64xf32>,
    %76 = arith.index_cast %c1_i32 : i32 to index
    %c0_32 = arith.constant 0 : index
    %c0_33 = arith.constant 0 : index
    %77 = vector.load %arg3[%76, %c0_32, %c0_33] : memref<8x8x64xf32, #tpu.memory_space<vmem>>, vector<1x8x64xf32>
    %78 = vector.shape_cast %77 : vector<1x8x64xf32> to vector<8x64xf32>
    %79 = vector.shape_cast %73 : vector<8x64xf32> to vector<1x8x64xf32>
    tpu.vector_store %arg3[%76, %c0_32, %c0_33], %79 {strides = array<i32>} : memref<8x8x64xf32, #tpu.memory_space<vmem>>, vector<1x8x64xf32>,
    %c2_i32 = arith.constant 2 : i32
    %c0_34 = arith.constant 0 : index
    %c0_35 = arith.constant 0 : index
    %80 = vector.load %arg4[%c0_34, %c0_35] : memref<8x64xf32, #tpu.memory_space<vmem>>, vector<8x64xf32>
    %c0_36 = arith.constant 0 : index
    %c0_37 = arith.constant 0 : index
    %81 = vector.load %arg5[%c0_36, %c0_37] : memref<8x64xf32, #tpu.memory_space<vmem>>, vector<8x64xf32>
    %82 = arith.index_cast %c2_i32 : i32 to index
    %c0_38 = arith.constant 0 : index
    %c0_39 = arith.constant 0 : index
    %83 = vector.load %arg1[%82, %c0_38, %c0_39] : memref<8x8x256xf32, #tpu.memory_space<vmem>>, vector<1x8x256xf32>
    %84 = vector.shape_cast %83 : vector<1x8x256xf32> to vector<8x256xf32>
    %cst_40 = arith.constant dense<0.000000e+00> : vector<8x256xf32>
    %85 = tpu.matmul %80, %3, %cst_40 {dimension_numbers = #tpu.dot_dimension_numbers<[1], [0], [0], [1], [0, 0, 1, 1], [], []>} : vector<8x64xf32>, vector<64x256xf32>, vector<8x256xf32> -> vector<8x256xf32>
    %86 = arith.addf %84, %85 : vector<8x256xf32>
    %87 = vector.extract_strided_slice %86 {offsets = [0, 0], sizes = [8, 64], strides = [1, 1]} : vector<8x256xf32> to vector<8x64xf32>
    %88 = arith.negf %87 : vector<8x64xf32>
    %89 = math.exp %88 : vector<8x64xf32>
    %cst_41 = arith.constant 1.000000e+00 : f32
    %90 = vector.broadcast %cst_41 : f32 to vector<8x64xf32>
    %91 = arith.addf %90, %89 : vector<8x64xf32>
    %92 = arith.divf %90, %91 : vector<8x64xf32>
    %93 = vector.extract_strided_slice %86 {offsets = [0, 64], sizes = [8, 64], strides = [1, 1]} : vector<8x256xf32> to vector<8x64xf32>
    %94 = arith.negf %93 : vector<8x64xf32>
    %95 = math.exp %94 : vector<8x64xf32>
    %cst_42 = arith.constant 1.000000e+00 : f32
    %96 = vector.broadcast %cst_42 : f32 to vector<8x64xf32>
    %97 = arith.addf %96, %95 : vector<8x64xf32>
    %98 = arith.divf %96, %97 : vector<8x64xf32>
    %99 = vector.extract_strided_slice %86 {offsets = [0, 128], sizes = [8, 64], strides = [1, 1]} : vector<8x256xf32> to vector<8x64xf32>
    %100 = math.tanh %99 : vector<8x64xf32>
    %101 = vector.extract_strided_slice %86 {offsets = [0, 192], sizes = [8, 64], strides = [1, 1]} : vector<8x256xf32> to vector<8x64xf32>
    %102 = arith.negf %101 : vector<8x64xf32>
    %103 = math.exp %102 : vector<8x64xf32>
    %cst_43 = arith.constant 1.000000e+00 : f32
    %104 = vector.broadcast %cst_43 : f32 to vector<8x64xf32>
    %105 = arith.addf %104, %103 : vector<8x64xf32>
    %106 = arith.divf %104, %105 : vector<8x64xf32>
    %107 = arith.mulf %98, %81 : vector<8x64xf32>
    %108 = arith.mulf %92, %100 : vector<8x64xf32>
    %109 = arith.addf %107, %108 : vector<8x64xf32>
    %110 = math.tanh %109 : vector<8x64xf32>
    %111 = arith.mulf %106, %110 : vector<8x64xf32>
    %c0_44 = arith.constant 0 : index
    %c0_45 = arith.constant 0 : index
    %112 = vector.load %arg4[%c0_44, %c0_45] : memref<8x64xf32, #tpu.memory_space<vmem>>, vector<8x64xf32>
    tpu.vector_store %arg4[%c0_44, %c0_45], %111 {strides = array<i32>} : memref<8x64xf32, #tpu.memory_space<vmem>>, vector<8x64xf32>,
    %c0_46 = arith.constant 0 : index
    %c0_47 = arith.constant 0 : index
    %113 = vector.load %arg5[%c0_46, %c0_47] : memref<8x64xf32, #tpu.memory_space<vmem>>, vector<8x64xf32>
    tpu.vector_store %arg5[%c0_46, %c0_47], %109 {strides = array<i32>} : memref<8x64xf32, #tpu.memory_space<vmem>>, vector<8x64xf32>,
    %114 = arith.index_cast %c2_i32 : i32 to index
    %c0_48 = arith.constant 0 : index
    %c0_49 = arith.constant 0 : index
    %115 = vector.load %arg3[%114, %c0_48, %c0_49] : memref<8x8x64xf32, #tpu.memory_space<vmem>>, vector<1x8x64xf32>
    %116 = vector.shape_cast %115 : vector<1x8x64xf32> to vector<8x64xf32>
    %117 = vector.shape_cast %111 : vector<8x64xf32> to vector<1x8x64xf32>
    tpu.vector_store %arg3[%114, %c0_48, %c0_49], %117 {strides = array<i32>} : memref<8x8x64xf32, #tpu.memory_space<vmem>>, vector<1x8x64xf32>,
    %c3_i32 = arith.constant 3 : i32
    %c0_50 = arith.constant 0 : index
    %c0_51 = arith.constant 0 : index
    %118 = vector.load %arg4[%c0_50, %c0_51] : memref<8x64xf32, #tpu.memory_space<vmem>>, vector<8x64xf32>
    %c0_52 = arith.constant 0 : index
    %c0_53 = arith.constant 0 : index
    %119 = vector.load %arg5[%c0_52, %c0_53] : memref<8x64xf32, #tpu.memory_space<vmem>>, vector<8x64xf32>
    %120 = arith.index_cast %c3_i32 : i32 to index
    %c0_54 = arith.constant 0 : index
    %c0_55 = arith.constant 0 : index
    %121 = vector.load %arg1[%120, %c0_54, %c0_55] : memref<8x8x256xf32, #tpu.memory_space<vmem>>, vector<1x8x256xf32>
    %122 = vector.shape_cast %121 : vector<1x8x256xf32> to vector<8x256xf32>
    %cst_56 = arith.constant dense<0.000000e+00> : vector<8x256xf32>
    %123 = tpu.matmul %118, %3, %cst_56 {dimension_numbers = #tpu.dot_dimension_numbers<[1], [0], [0], [1], [0, 0, 1, 1], [], []>} : vector<8x64xf32>, vector<64x256xf32>, vector<8x256xf32> -> vector<8x256xf32>
    %124 = arith.addf %122, %123 : vector<8x256xf32>
    %125 = vector.extract_strided_slice %124 {offsets = [0, 0], sizes = [8, 64], strides = [1, 1]} : vector<8x256xf32> to vector<8x64xf32>
    %126 = arith.negf %125 : vector<8x64xf32>
    %127 = math.exp %126 : vector<8x64xf32>
    %cst_57 = arith.constant 1.000000e+00 : f32
    %128 = vector.broadcast %cst_57 : f32 to vector<8x64xf32>
    %129 = arith.addf %128, %127 : vector<8x64xf32>
    %130 = arith.divf %128, %129 : vector<8x64xf32>
    %131 = vector.extract_strided_slice %124 {offsets = [0, 64], sizes = [8, 64], strides = [1, 1]} : vector<8x256xf32> to vector<8x64xf32>
    %132 = arith.negf %131 : vector<8x64xf32>
    %133 = math.exp %132 : vector<8x64xf32>
    %cst_58 = arith.constant 1.000000e+00 : f32
    %134 = vector.broadcast %cst_58 : f32 to vector<8x64xf32>
    %135 = arith.addf %134, %133 : vector<8x64xf32>
    %136 = arith.divf %134, %135 : vector<8x64xf32>
    %137 = vector.extract_strided_slice %124 {offsets = [0, 128], sizes = [8, 64], strides = [1, 1]} : vector<8x256xf32> to vector<8x64xf32>
    %138 = math.tanh %137 : vector<8x64xf32>
    %139 = vector.extract_strided_slice %124 {offsets = [0, 192], sizes = [8, 64], strides = [1, 1]} : vector<8x256xf32> to vector<8x64xf32>
    %140 = arith.negf %139 : vector<8x64xf32>
    %141 = math.exp %140 : vector<8x64xf32>
    %cst_59 = arith.constant 1.000000e+00 : f32
    %142 = vector.broadcast %cst_59 : f32 to vector<8x64xf32>
    %143 = arith.addf %142, %141 : vector<8x64xf32>
    %144 = arith.divf %142, %143 : vector<8x64xf32>
    %145 = arith.mulf %136, %119 : vector<8x64xf32>
    %146 = arith.mulf %130, %138 : vector<8x64xf32>
    %147 = arith.addf %145, %146 : vector<8x64xf32>
    %148 = math.tanh %147 : vector<8x64xf32>
    %149 = arith.mulf %144, %148 : vector<8x64xf32>
    %c0_60 = arith.constant 0 : index
    %c0_61 = arith.constant 0 : index
    %150 = vector.load %arg4[%c0_60, %c0_61] : memref<8x64xf32, #tpu.memory_space<vmem>>, vector<8x64xf32>
    tpu.vector_store %arg4[%c0_60, %c0_61], %149 {strides = array<i32>} : memref<8x64xf32, #tpu.memory_space<vmem>>, vector<8x64xf32>,
    %c0_62 = arith.constant 0 : index
    %c0_63 = arith.constant 0 : index
    %151 = vector.load %arg5[%c0_62, %c0_63] : memref<8x64xf32, #tpu.memory_space<vmem>>, vector<8x64xf32>
    tpu.vector_store %arg5[%c0_62, %c0_63], %147 {strides = array<i32>} : memref<8x64xf32, #tpu.memory_space<vmem>>, vector<8x64xf32>,
    %152 = arith.index_cast %c3_i32 : i32 to index
    %c0_64 = arith.constant 0 : index
    %c0_65 = arith.constant 0 : index
    %153 = vector.load %arg3[%152, %c0_64, %c0_65] : memref<8x8x64xf32, #tpu.memory_space<vmem>>, vector<1x8x64xf32>
    %154 = vector.shape_cast %153 : vector<1x8x64xf32> to vector<8x64xf32>
    %155 = vector.shape_cast %149 : vector<8x64xf32> to vector<1x8x64xf32>
    tpu.vector_store %arg3[%152, %c0_64, %c0_65], %155 {strides = array<i32>} : memref<8x8x64xf32, #tpu.memory_space<vmem>>, vector<1x8x64xf32>,
    %c4_i32 = arith.constant 4 : i32
    %c0_66 = arith.constant 0 : index
    %c0_67 = arith.constant 0 : index
    %156 = vector.load %arg4[%c0_66, %c0_67] : memref<8x64xf32, #tpu.memory_space<vmem>>, vector<8x64xf32>
    %c0_68 = arith.constant 0 : index
    %c0_69 = arith.constant 0 : index
    %157 = vector.load %arg5[%c0_68, %c0_69] : memref<8x64xf32, #tpu.memory_space<vmem>>, vector<8x64xf32>
    %158 = arith.index_cast %c4_i32 : i32 to index
    %c0_70 = arith.constant 0 : index
    %c0_71 = arith.constant 0 : index
    %159 = vector.load %arg1[%158, %c0_70, %c0_71] : memref<8x8x256xf32, #tpu.memory_space<vmem>>, vector<1x8x256xf32>
    %160 = vector.shape_cast %159 : vector<1x8x256xf32> to vector<8x256xf32>
    %cst_72 = arith.constant dense<0.000000e+00> : vector<8x256xf32>
    %161 = tpu.matmul %156, %3, %cst_72 {dimension_numbers = #tpu.dot_dimension_numbers<[1], [0], [0], [1], [0, 0, 1, 1], [], []>} : vector<8x64xf32>, vector<64x256xf32>, vector<8x256xf32> -> vector<8x256xf32>
    %162 = arith.addf %160, %161 : vector<8x256xf32>
    %163 = vector.extract_strided_slice %162 {offsets = [0, 0], sizes = [8, 64], strides = [1, 1]} : vector<8x256xf32> to vector<8x64xf32>
    %164 = arith.negf %163 : vector<8x64xf32>
    %165 = math.exp %164 : vector<8x64xf32>
    %cst_73 = arith.constant 1.000000e+00 : f32
    %166 = vector.broadcast %cst_73 : f32 to vector<8x64xf32>
    %167 = arith.addf %166, %165 : vector<8x64xf32>
    %168 = arith.divf %166, %167 : vector<8x64xf32>
    %169 = vector.extract_strided_slice %162 {offsets = [0, 64], sizes = [8, 64], strides = [1, 1]} : vector<8x256xf32> to vector<8x64xf32>
    %170 = arith.negf %169 : vector<8x64xf32>
    %171 = math.exp %170 : vector<8x64xf32>
    %cst_74 = arith.constant 1.000000e+00 : f32
    %172 = vector.broadcast %cst_74 : f32 to vector<8x64xf32>
    %173 = arith.addf %172, %171 : vector<8x64xf32>
    %174 = arith.divf %172, %173 : vector<8x64xf32>
    %175 = vector.extract_strided_slice %162 {offsets = [0, 128], sizes = [8, 64], strides = [1, 1]} : vector<8x256xf32> to vector<8x64xf32>
    %176 = math.tanh %175 : vector<8x64xf32>
    %177 = vector.extract_strided_slice %162 {offsets = [0, 192], sizes = [8, 64], strides = [1, 1]} : vector<8x256xf32> to vector<8x64xf32>
    %178 = arith.negf %177 : vector<8x64xf32>
    %179 = math.exp %178 : vector<8x64xf32>
    %cst_75 = arith.constant 1.000000e+00 : f32
    %180 = vector.broadcast %cst_75 : f32 to vector<8x64xf32>
    %181 = arith.addf %180, %179 : vector<8x64xf32>
    %182 = arith.divf %180, %181 : vector<8x64xf32>
    %183 = arith.mulf %174, %157 : vector<8x64xf32>
    %184 = arith.mulf %168, %176 : vector<8x64xf32>
    %185 = arith.addf %183, %184 : vector<8x64xf32>
    %186 = math.tanh %185 : vector<8x64xf32>
    %187 = arith.mulf %182, %186 : vector<8x64xf32>
    %c0_76 = arith.constant 0 : index
    %c0_77 = arith.constant 0 : index
    %188 = vector.load %arg4[%c0_76, %c0_77] : memref<8x64xf32, #tpu.memory_space<vmem>>, vector<8x64xf32>
    tpu.vector_store %arg4[%c0_76, %c0_77], %187 {strides = array<i32>} : memref<8x64xf32, #tpu.memory_space<vmem>>, vector<8x64xf32>,
    %c0_78 = arith.constant 0 : index
    %c0_79 = arith.constant 0 : index
    %189 = vector.load %arg5[%c0_78, %c0_79] : memref<8x64xf32, #tpu.memory_space<vmem>>, vector<8x64xf32>
    tpu.vector_store %arg5[%c0_78, %c0_79], %185 {strides = array<i32>} : memref<8x64xf32, #tpu.memory_space<vmem>>, vector<8x64xf32>,
    %190 = arith.index_cast %c4_i32 : i32 to index
    %c0_80 = arith.constant 0 : index
    %c0_81 = arith.constant 0 : index
    %191 = vector.load %arg3[%190, %c0_80, %c0_81] : memref<8x8x64xf32, #tpu.memory_space<vmem>>, vector<1x8x64xf32>
    %192 = vector.shape_cast %191 : vector<1x8x64xf32> to vector<8x64xf32>
    %193 = vector.shape_cast %187 : vector<8x64xf32> to vector<1x8x64xf32>
    tpu.vector_store %arg3[%190, %c0_80, %c0_81], %193 {strides = array<i32>} : memref<8x8x64xf32, #tpu.memory_space<vmem>>, vector<1x8x64xf32>,
    %c5_i32 = arith.constant 5 : i32
    %c0_82 = arith.constant 0 : index
    %c0_83 = arith.constant 0 : index
    %194 = vector.load %arg4[%c0_82, %c0_83] : memref<8x64xf32, #tpu.memory_space<vmem>>, vector<8x64xf32>
    %c0_84 = arith.constant 0 : index
    %c0_85 = arith.constant 0 : index
    %195 = vector.load %arg5[%c0_84, %c0_85] : memref<8x64xf32, #tpu.memory_space<vmem>>, vector<8x64xf32>
    %196 = arith.index_cast %c5_i32 : i32 to index
    %c0_86 = arith.constant 0 : index
    %c0_87 = arith.constant 0 : index
    %197 = vector.load %arg1[%196, %c0_86, %c0_87] : memref<8x8x256xf32, #tpu.memory_space<vmem>>, vector<1x8x256xf32>
    %198 = vector.shape_cast %197 : vector<1x8x256xf32> to vector<8x256xf32>
    %cst_88 = arith.constant dense<0.000000e+00> : vector<8x256xf32>
    %199 = tpu.matmul %194, %3, %cst_88 {dimension_numbers = #tpu.dot_dimension_numbers<[1], [0], [0], [1], [0, 0, 1, 1], [], []>} : vector<8x64xf32>, vector<64x256xf32>, vector<8x256xf32> -> vector<8x256xf32>
    %200 = arith.addf %198, %199 : vector<8x256xf32>
    %201 = vector.extract_strided_slice %200 {offsets = [0, 0], sizes = [8, 64], strides = [1, 1]} : vector<8x256xf32> to vector<8x64xf32>
    %202 = arith.negf %201 : vector<8x64xf32>
    %203 = math.exp %202 : vector<8x64xf32>
    %cst_89 = arith.constant 1.000000e+00 : f32
    %204 = vector.broadcast %cst_89 : f32 to vector<8x64xf32>
    %205 = arith.addf %204, %203 : vector<8x64xf32>
    %206 = arith.divf %204, %205 : vector<8x64xf32>
    %207 = vector.extract_strided_slice %200 {offsets = [0, 64], sizes = [8, 64], strides = [1, 1]} : vector<8x256xf32> to vector<8x64xf32>
    %208 = arith.negf %207 : vector<8x64xf32>
    %209 = math.exp %208 : vector<8x64xf32>
    %cst_90 = arith.constant 1.000000e+00 : f32
    %210 = vector.broadcast %cst_90 : f32 to vector<8x64xf32>
    %211 = arith.addf %210, %209 : vector<8x64xf32>
    %212 = arith.divf %210, %211 : vector<8x64xf32>
    %213 = vector.extract_strided_slice %200 {offsets = [0, 128], sizes = [8, 64], strides = [1, 1]} : vector<8x256xf32> to vector<8x64xf32>
    %214 = math.tanh %213 : vector<8x64xf32>
    %215 = vector.extract_strided_slice %200 {offsets = [0, 192], sizes = [8, 64], strides = [1, 1]} : vector<8x256xf32> to vector<8x64xf32>
    %216 = arith.negf %215 : vector<8x64xf32>
    %217 = math.exp %216 : vector<8x64xf32>
    %cst_91 = arith.constant 1.000000e+00 : f32
    %218 = vector.broadcast %cst_91 : f32 to vector<8x64xf32>
    %219 = arith.addf %218, %217 : vector<8x64xf32>
    %220 = arith.divf %218, %219 : vector<8x64xf32>
    %221 = arith.mulf %212, %195 : vector<8x64xf32>
    %222 = arith.mulf %206, %214 : vector<8x64xf32>
    %223 = arith.addf %221, %222 : vector<8x64xf32>
    %224 = math.tanh %223 : vector<8x64xf32>
    %225 = arith.mulf %220, %224 : vector<8x64xf32>
    %c0_92 = arith.constant 0 : index
    %c0_93 = arith.constant 0 : index
    %226 = vector.load %arg4[%c0_92, %c0_93] : memref<8x64xf32, #tpu.memory_space<vmem>>, vector<8x64xf32>
    tpu.vector_store %arg4[%c0_92, %c0_93], %225 {strides = array<i32>} : memref<8x64xf32, #tpu.memory_space<vmem>>, vector<8x64xf32>,
    %c0_94 = arith.constant 0 : index
    %c0_95 = arith.constant 0 : index
    %227 = vector.load %arg5[%c0_94, %c0_95] : memref<8x64xf32, #tpu.memory_space<vmem>>, vector<8x64xf32>
    tpu.vector_store %arg5[%c0_94, %c0_95], %223 {strides = array<i32>} : memref<8x64xf32, #tpu.memory_space<vmem>>, vector<8x64xf32>,
    %228 = arith.index_cast %c5_i32 : i32 to index
    %c0_96 = arith.constant 0 : index
    %c0_97 = arith.constant 0 : index
    %229 = vector.load %arg3[%228, %c0_96, %c0_97] : memref<8x8x64xf32, #tpu.memory_space<vmem>>, vector<1x8x64xf32>
    %230 = vector.shape_cast %229 : vector<1x8x64xf32> to vector<8x64xf32>
    %231 = vector.shape_cast %225 : vector<8x64xf32> to vector<1x8x64xf32>
    tpu.vector_store %arg3[%228, %c0_96, %c0_97], %231 {strides = array<i32>} : memref<8x8x64xf32, #tpu.memory_space<vmem>>, vector<1x8x64xf32>,
    %c6_i32 = arith.constant 6 : i32
    %c0_98 = arith.constant 0 : index
    %c0_99 = arith.constant 0 : index
    %232 = vector.load %arg4[%c0_98, %c0_99] : memref<8x64xf32, #tpu.memory_space<vmem>>, vector<8x64xf32>
    %c0_100 = arith.constant 0 : index
    %c0_101 = arith.constant 0 : index
    %233 = vector.load %arg5[%c0_100, %c0_101] : memref<8x64xf32, #tpu.memory_space<vmem>>, vector<8x64xf32>
    %234 = arith.index_cast %c6_i32 : i32 to index
    %c0_102 = arith.constant 0 : index
    %c0_103 = arith.constant 0 : index
    %235 = vector.load %arg1[%234, %c0_102, %c0_103] : memref<8x8x256xf32, #tpu.memory_space<vmem>>, vector<1x8x256xf32>
    %236 = vector.shape_cast %235 : vector<1x8x256xf32> to vector<8x256xf32>
    %cst_104 = arith.constant dense<0.000000e+00> : vector<8x256xf32>
    %237 = tpu.matmul %232, %3, %cst_104 {dimension_numbers = #tpu.dot_dimension_numbers<[1], [0], [0], [1], [0, 0, 1, 1], [], []>} : vector<8x64xf32>, vector<64x256xf32>, vector<8x256xf32> -> vector<8x256xf32>
    %238 = arith.addf %236, %237 : vector<8x256xf32>
    %239 = vector.extract_strided_slice %238 {offsets = [0, 0], sizes = [8, 64], strides = [1, 1]} : vector<8x256xf32> to vector<8x64xf32>
    %240 = arith.negf %239 : vector<8x64xf32>
    %241 = math.exp %240 : vector<8x64xf32>
    %cst_105 = arith.constant 1.000000e+00 : f32
    %242 = vector.broadcast %cst_105 : f32 to vector<8x64xf32>
    %243 = arith.addf %242, %241 : vector<8x64xf32>
    %244 = arith.divf %242, %243 : vector<8x64xf32>
    %245 = vector.extract_strided_slice %238 {offsets = [0, 64], sizes = [8, 64], strides = [1, 1]} : vector<8x256xf32> to vector<8x64xf32>
    %246 = arith.negf %245 : vector<8x64xf32>
    %247 = math.exp %246 : vector<8x64xf32>
    %cst_106 = arith.constant 1.000000e+00 : f32
    %248 = vector.broadcast %cst_106 : f32 to vector<8x64xf32>
    %249 = arith.addf %248, %247 : vector<8x64xf32>
    %250 = arith.divf %248, %249 : vector<8x64xf32>
    %251 = vector.extract_strided_slice %238 {offsets = [0, 128], sizes = [8, 64], strides = [1, 1]} : vector<8x256xf32> to vector<8x64xf32>
    %252 = math.tanh %251 : vector<8x64xf32>
    %253 = vector.extract_strided_slice %238 {offsets = [0, 192], sizes = [8, 64], strides = [1, 1]} : vector<8x256xf32> to vector<8x64xf32>
    %254 = arith.negf %253 : vector<8x64xf32>
    %255 = math.exp %254 : vector<8x64xf32>
    %cst_107 = arith.constant 1.000000e+00 : f32
    %256 = vector.broadcast %cst_107 : f32 to vector<8x64xf32>
    %257 = arith.addf %256, %255 : vector<8x64xf32>
    %258 = arith.divf %256, %257 : vector<8x64xf32>
    %259 = arith.mulf %250, %233 : vector<8x64xf32>
    %260 = arith.mulf %244, %252 : vector<8x64xf32>
    %261 = arith.addf %259, %260 : vector<8x64xf32>
    %262 = math.tanh %261 : vector<8x64xf32>
    %263 = arith.mulf %258, %262 : vector<8x64xf32>
    %c0_108 = arith.constant 0 : index
    %c0_109 = arith.constant 0 : index
    %264 = vector.load %arg4[%c0_108, %c0_109] : memref<8x64xf32, #tpu.memory_space<vmem>>, vector<8x64xf32>
    tpu.vector_store %arg4[%c0_108, %c0_109], %263 {strides = array<i32>} : memref<8x64xf32, #tpu.memory_space<vmem>>, vector<8x64xf32>,
    %c0_110 = arith.constant 0 : index
    %c0_111 = arith.constant 0 : index
    %265 = vector.load %arg5[%c0_110, %c0_111] : memref<8x64xf32, #tpu.memory_space<vmem>>, vector<8x64xf32>
    tpu.vector_store %arg5[%c0_110, %c0_111], %261 {strides = array<i32>} : memref<8x64xf32, #tpu.memory_space<vmem>>, vector<8x64xf32>,
    %266 = arith.index_cast %c6_i32 : i32 to index
    %c0_112 = arith.constant 0 : index
    %c0_113 = arith.constant 0 : index
    %267 = vector.load %arg3[%266, %c0_112, %c0_113] : memref<8x8x64xf32, #tpu.memory_space<vmem>>, vector<1x8x64xf32>
    %268 = vector.shape_cast %267 : vector<1x8x64xf32> to vector<8x64xf32>
    %269 = vector.shape_cast %263 : vector<8x64xf32> to vector<1x8x64xf32>
    tpu.vector_store %arg3[%266, %c0_112, %c0_113], %269 {strides = array<i32>} : memref<8x8x64xf32, #tpu.memory_space<vmem>>, vector<1x8x64xf32>,
    %c7_i32 = arith.constant 7 : i32
    %c0_114 = arith.constant 0 : index
    %c0_115 = arith.constant 0 : index
    %270 = vector.load %arg4[%c0_114, %c0_115] : memref<8x64xf32, #tpu.memory_space<vmem>>, vector<8x64xf32>
    %c0_116 = arith.constant 0 : index
    %c0_117 = arith.constant 0 : index
    %271 = vector.load %arg5[%c0_116, %c0_117] : memref<8x64xf32, #tpu.memory_space<vmem>>, vector<8x64xf32>
    %272 = arith.index_cast %c7_i32 : i32 to index
    %c0_118 = arith.constant 0 : index
    %c0_119 = arith.constant 0 : index
    %273 = vector.load %arg1[%272, %c0_118, %c0_119] : memref<8x8x256xf32, #tpu.memory_space<vmem>>, vector<1x8x256xf32>
    %274 = vector.shape_cast %273 : vector<1x8x256xf32> to vector<8x256xf32>
    %cst_120 = arith.constant dense<0.000000e+00> : vector<8x256xf32>
    %275 = tpu.matmul %270, %3, %cst_120 {dimension_numbers = #tpu.dot_dimension_numbers<[1], [0], [0], [1], [0, 0, 1, 1], [], []>} : vector<8x64xf32>, vector<64x256xf32>, vector<8x256xf32> -> vector<8x256xf32>
    %276 = arith.addf %274, %275 : vector<8x256xf32>
    %277 = vector.extract_strided_slice %276 {offsets = [0, 0], sizes = [8, 64], strides = [1, 1]} : vector<8x256xf32> to vector<8x64xf32>
    %278 = arith.negf %277 : vector<8x64xf32>
    %279 = math.exp %278 : vector<8x64xf32>
    %cst_121 = arith.constant 1.000000e+00 : f32
    %280 = vector.broadcast %cst_121 : f32 to vector<8x64xf32>
    %281 = arith.addf %280, %279 : vector<8x64xf32>
    %282 = arith.divf %280, %281 : vector<8x64xf32>
    %283 = vector.extract_strided_slice %276 {offsets = [0, 64], sizes = [8, 64], strides = [1, 1]} : vector<8x256xf32> to vector<8x64xf32>
    %284 = arith.negf %283 : vector<8x64xf32>
    %285 = math.exp %284 : vector<8x64xf32>
    %cst_122 = arith.constant 1.000000e+00 : f32
    %286 = vector.broadcast %cst_122 : f32 to vector<8x64xf32>
    %287 = arith.addf %286, %285 : vector<8x64xf32>
    %288 = arith.divf %286, %287 : vector<8x64xf32>
    %289 = vector.extract_strided_slice %276 {offsets = [0, 128], sizes = [8, 64], strides = [1, 1]} : vector<8x256xf32> to vector<8x64xf32>
    %290 = math.tanh %289 : vector<8x64xf32>
    %291 = vector.extract_strided_slice %276 {offsets = [0, 192], sizes = [8, 64], strides = [1, 1]} : vector<8x256xf32> to vector<8x64xf32>
    %292 = arith.negf %291 : vector<8x64xf32>
    %293 = math.exp %292 : vector<8x64xf32>
    %cst_123 = arith.constant 1.000000e+00 : f32
    %294 = vector.broadcast %cst_123 : f32 to vector<8x64xf32>
    %295 = arith.addf %294, %293 : vector<8x64xf32>
    %296 = arith.divf %294, %295 : vector<8x64xf32>
    %297 = arith.mulf %288, %271 : vector<8x64xf32>
    %298 = arith.mulf %282, %290 : vector<8x64xf32>
    %299 = arith.addf %297, %298 : vector<8x64xf32>
    %300 = math.tanh %299 : vector<8x64xf32>
    %301 = arith.mulf %296, %300 : vector<8x64xf32>
    %c0_124 = arith.constant 0 : index
    %c0_125 = arith.constant 0 : index
    %302 = vector.load %arg4[%c0_124, %c0_125] : memref<8x64xf32, #tpu.memory_space<vmem>>, vector<8x64xf32>
    tpu.vector_store %arg4[%c0_124, %c0_125], %301 {strides = array<i32>} : memref<8x64xf32, #tpu.memory_space<vmem>>, vector<8x64xf32>,
    %c0_126 = arith.constant 0 : index
    %c0_127 = arith.constant 0 : index
    %303 = vector.load %arg5[%c0_126, %c0_127] : memref<8x64xf32, #tpu.memory_space<vmem>>, vector<8x64xf32>
    tpu.vector_store %arg5[%c0_126, %c0_127], %299 {strides = array<i32>} : memref<8x64xf32, #tpu.memory_space<vmem>>, vector<8x64xf32>,
    %304 = arith.index_cast %c7_i32 : i32 to index
    %c0_128 = arith.constant 0 : index
    %c0_129 = arith.constant 0 : index
    %305 = vector.load %arg3[%304, %c0_128, %c0_129] : memref<8x8x64xf32, #tpu.memory_space<vmem>>, vector<1x8x64xf32>
    %306 = vector.shape_cast %305 : vector<1x8x64xf32> to vector<8x64xf32>
    %307 = vector.shape_cast %301 : vector<8x64xf32> to vector<1x8x64xf32>
    tpu.vector_store %arg3[%304, %c0_128, %c0_129], %307 {strides = array<i32>} : memref<8x8x64xf32, #tpu.memory_space<vmem>>, vector<1x8x64xf32>,
    %c8_i32 = arith.constant 8 : i32
    return
  }
  func.func @transform_0(%arg0: i32) -> (i32, i32, i32) {
    %c0_i32 = arith.constant 0 : i32
    %c0_i32_0 = arith.constant 0 : i32
    %c0_i32_1 = arith.constant 0 : i32
    return %arg0, %c0_i32, %c0_i32_0 : i32, i32, i32
  }
  func.func @transform_1(%arg0: i32) -> (i32, i32) {
    %c0_i32 = arith.constant 0 : i32
    %c0_i32_0 = arith.constant 0 : i32
    %c0_i32_1 = arith.constant 0 : i32
    return %c0_i32, %c0_i32_0 : i32, i32
  }
  func.func @transform_2(%arg0: i32) -> (i32, i32, i32) {
    %c0_i32 = arith.constant 0 : i32
    %c0_i32_0 = arith.constant 0 : i32
    %c0_i32_1 = arith.constant 0 : i32
    return %arg0, %c0_i32, %c0_i32_0 : i32, i32, i32
  }
}

</mosaic_0001>

<bundles_post_ra>
// kernel: tpu_custom_call.1
= control target key start
LH: loop header
LB: loop body
LE: loop exit
PB: predicated region body
PF: predicated region fallthrough
CT: control target
= control target key end

     0   :  { %7 = vsyncpa [#allocation5], 0  ;;  %s1577_s0 = inlined_call_operand.hbm [shape: f32[8,8,256], index: 0, kind: input, shape index: {}]   ;;  %s1578_s1 = inlined_call_operand.hbm [shape: f32[64,256], index: 1, kind: input, shape index: {}]   ;;  %s1579_s2 = inlined_call_operand.hbm [shape: f32[8,8,64], index: 2, kind: output, shape index: {}]  }
   0x1   :  { %8 = vsyncpa [#allocation8], 0 }
   0x2   :  { %9 = vsyncpa [#allocation6], 0  ;;  %s1361_s9 = smov [#allocation4]   ;;  %s1289_s13 = scalar_lea.hbm %s1577_s0, 2048 }
   0x3   :  { %s15_s10 = sshll.u32 %s1361_s9, 4  ;;  %p1290_p0 = scmp.ne.s32.totalorder %s1577_s0, %s1289_s13  ;;  %s16_s10 = int_to_ptr.vmem [resolvable:$true] %s15_s10 }
   0x4   :  { %p1293_p1 = scmp.lt.u32.totalorder %s1289_s13, %s1577_s0 }
   0x6   :  { %p1295_p2 = pnand %p1293_p1, %p1290_p0 }
   0x8   :  { %1298 = shalt.err (!%p1295_p2)
}
   0x9   :  { %s1299_s18 = scalar_lea.vmem %s16_s10, 2048  ;;  %p1304_p4 = scmp.lt.s32.totalorder %s16_s10, %s16_s10 }
   0xa   :  { %p1300_p3 = scmp.ne.s32.totalorder %s16_s10, %s1299_s18  ;;  %p1305_p5 = scmp.lt.s32.totalorder %s1299_s18, %s1299_s18 }
   0xc   :  { %p1306_p6 = por %p1305_p5, %p1304_p4 }
   0xe   :  { %p1307_p7 = pnand %p1306_p6, %p1300_p3 }
  0x10   :  { %1310 = shalt.err (!%p1307_p7)
}
  0x11   :  { %s1362_s19 = smov 256   ;;  %s1363_s20 = smov 16  }
  0x12   :  { %21 = dma.hbm_to_vmem [thread:$0]  %s1577_s0, 2048, %s16_s10, [#allocation5], %s1362_s19, %s1362_s19, %s1363_s20  }
  0x13   :  { %s1364_s23 = smov [#allocation7]   ;;  %s1311_s27 = scalar_lea.hbm %s1578_s1, 2048 }
  0x14   :  { %s27_s24 = sshll.u32 %s1364_s23, 4  ;;  %p1312_p8 = scmp.ne.s32.totalorder %s1578_s1, %s1311_s27  ;;  %s28_s24 = int_to_ptr.vmem [resolvable:$true] %s27_s24 }
  0x15   :  { %p1315_p9 = scmp.lt.u32.totalorder %s1311_s27, %s1578_s1 }
  0x17   :  { %p1317_p10 = pnand %p1315_p9, %p1312_p8 }
  0x19   :  { %1320 = shalt.err (!%p1317_p10)
}
  0x1a   :  { %s1321_s4 = scalar_lea.vmem %s28_s24, 2048  ;;  %p1326_p12 = scmp.lt.s32.totalorder %s28_s24, %s28_s24 }
  0x1b   :  { %p1322_p11 = scmp.ne.s32.totalorder %s28_s24, %s1321_s4  ;;  %p1327_p13 = scmp.lt.s32.totalorder %s1321_s4, %s1321_s4 }
  0x1d   :  { %p1328_p0 = por %p1327_p13, %p1326_p12 }
  0x1f   :  { %p1329_p1 = pnand %p1328_p0, %p1322_p11 }
  0x21   :  { %1332 = shalt.err (!%p1329_p1)
}
  0x22   :  { %33 = dma.hbm_to_vmem [thread:$0]  %s1578_s1, 2048, %s28_s24, [#allocation8], %s1362_s19, %s1362_s19, %s1363_s20  }
  0x23   :  { %1355 = dma.done.wait [#allocation5], 2048  }
  0x24   :  { %1356 = vsyncadd [#allocation5], 4294965248 }
  0x25   :  { %1357 = dma.done.wait [#allocation8], 2048  }
  0x26   :  { %1358 = vsyncadd [#allocation8], 4294965248  ;;  %vm44_vm0 = vcmask 523264   ;;  %v1365_v0 = vmov 0.0   ;;  %v48_v1 = vld [vmem:[#allocation7 + $0x8] sm:$0xff]  ;;  %v50_v2 = vld [vmem:[#allocation7 + $0x18] sm:$0xff] }
  0x27   :  { %135 = vmatprep.mubr.f32.mxu0 %v1365_v0  ;;  %45 = vst.msk [vmem:[#allocation2] sm:$0xff] %vm44_vm0, %v1365_v0  ;;  %46 = vst.msk [vmem:[#allocation3] sm:$0xff] %vm44_vm0, %v1365_v0  ;;  %253 = vmatprep.mubr.f32.mxu1 %v1365_v0  ;;  %v47_v3 = vld [vmem:[#allocation7] sm:$0xff]  ;;  %v1415_v4 = vpack.c.bf16 %v50_v2, %v48_v1  ;;  %v49_v5 = vld [vmem:[#allocation7 + $0x10] sm:$0xff]  ;;  %s1366_s1 = smov 64   ;;  %s1367_s6 = smov [#allocation9]  }
  0x28   :  { %v52_v6 = vld [vmem:[#allocation7 + $0x28] sm:$0xff]  ;;  %v54_v7 = vld [vmem:[#allocation7 + $0x38] sm:$0xff]  ;;  %v1417_v8 = vpack.c.bf16 %v49_v5, %v47_v3  ;;  %v51_v10 = vld [vmem:[#allocation7 + $0x20] sm:$0xff]  ;;  %s1019_s7 = sshll.u32 %s1367_s6, 4  ;;  %s1020_s7 = int_to_ptr.vmem [resolvable:$true] %s1019_s7 }
  0x29   :  { %v1419_v9 = vpack.c.bf16 %v54_v7, %v52_v6  ;;  %v53_v11 = vld [vmem:[#allocation7 + $0x30] sm:$0xff]  ;;  %v56_v12 = vld [vmem:[#allocation7 + $0x48] sm:$0xff]  ;;  %1057 = vmatprep.subr.bf16.mxu0 %v1415_v4  ;;  %v58_v13 = vld [vmem:[#allocation7 + $0x58] sm:$0xff]  ;;  %1073 = vmatprep.subr.bf16.mxu1 %v1415_v4  ;;  %s1333_s8 = scalar_lea.vmem %s1020_s7, 1024  ;;  %p1338_p3 = scmp.lt.s32.totalorder %s1020_s7, %s1020_s7 }
  0x2a   :  { %1059 = vmatpush1.bf16.msra.mxu0 %v1417_v8  ;;  %v1424_v14 = vpack.c.bf16 %v53_v11, %v51_v10  ;;  %1075 = vmatpush1.bf16.msra.mxu1 %v1417_v8  ;;  %v1428_v15 = vpack.c.bf16 %v58_v13, %v56_v12  ;;  %v55_v16 = vld [vmem:[#allocation7 + $0x40] sm:$0xff]  ;;  %v57_v17 = vld [vmem:[#allocation7 + $0x50] sm:$0xff]  ;;  %v60_v19 = vld [vmem:[#allocation7 + $0x68] sm:$0xff]  ;;  %p1334_p2 = scmp.ne.s32.totalorder %s1020_s7, %s1333_s8  ;;  %p1339_p4 = scmp.lt.s32.totalorder %s1333_s8, %s1333_s8 }
  0x2b   :  { %1061 = vmatprep.subr.bf16.mxu0 %v1419_v9  ;;  %1077 = vmatprep.subr.bf16.mxu1 %v1419_v9  ;;  %v62_v20 = vld [vmem:[#allocation7 + $0x78] sm:$0xff]  ;;  %v1433_v21 = vpack.c.bf16 %v57_v17, %v55_v16  ;;  %v59_v23 = vld [vmem:[#allocation7 + $0x60] sm:$0xff]  ;;  %v61_v24 = vld [vmem:[#allocation7 + $0x70] sm:$0xff] }
  0x2c   :  { %v1437_v22 = vpack.c.bf16 %v62_v20, %v60_v19  ;;  %v1441_v25 = vpack.c.bf16 %v61_v24, %v59_v23  ;;  %v65_v27 = vld [vmem:[#allocation4] sm:$0xff]  ;;  %v66_v32 = vld [vmem:[#allocation4 + $0x8] sm:$0xff]  ;;  %v184_v53 = vld [vmem:[#allocation4 + $0x10] sm:$0xff]  ;;  %p1340_p5 = por %p1339_p4, %p1338_p3 }
  0x2d   :  { %v185_v58 = vld [vmem:[#allocation4 + $0x18] sm:$0xff]  ;;  %v303_v23 = vld [vmem:[#allocation4 + $0x20] sm:$0xff] }
  0x2e   :  { %v64_v18 = vld [vmem:[#allocation3] sm:$0xff]  ;;  %1063 = vmatpush1.bf16.msra.mxu0 %v1424_v14  ;;  %1079 = vmatpush1.bf16.msra.mxu1 %v1424_v14  ;;  %v63_v26 = vld [vmem:[#allocation2] sm:$0xff]  ;;  %p1341_p6 = pnand %p1340_p5, %p1334_p2 }
  0x2f   :  { %158 = vrot.lane.b32.xlu0 %v64_v18, %s1366_s1  ;;  %1065 = vmatprep.subr.bf16.mxu0 %v1428_v15 }
  0x30   :  { %1081 = vmatprep.subr.bf16.mxu1 %v1428_v15 }
  0x32   :  { %1067 = vmatpush1.bf16.msra.mxu0 %v1433_v21  ;;  %1083 = vmatpush1.bf16.msra.mxu1 %v1433_v21 }
  0x33   :  { %1069 = vmatprep.subr.bf16.mxu0 %v1437_v22  ;;  %1085 = vmatprep.subr.bf16.mxu1 %v1437_v22 }
  0x36   :  { %1071 = vmatpush1.bf16.msra.mxu0 %v1441_v25  ;;  %1087 = vmatpush1.bf16.msra.mxu1 %v1441_v25 }
  0x37   :  { %1089 = vmatprep.subr.bf16.mxu0 %v1415_v4  ;;  %1105 = vmatprep.subr.bf16.mxu1 %v1415_v4 }
  0x39   :  { %1032 = vmatmul.mubr.msk.f32.vlgmr.msra.gmra.mrb[0].mxu0 %vm44_vm0, %v63_v26 }
  0x3a   :  { %1091 = vmatpush1.bf16.msra.mxu0 %v1417_v8  ;;  %372 = vmatprep.mubr.f32.mxu0 %v1365_v0 }
  0x3b   :  { %1093 = vmatprep.subr.bf16.mxu0 %v1419_v9 }
  0x3e   :  { %1095 = vmatpush1.bf16.msra.mxu0 %v1424_v14 }
  0x3f   :  { %1097 = vmatprep.subr.bf16.mxu0 %v1428_v15 }
  0x42   :  { %1099 = vmatpush1.bf16.msra.mxu0 %v1433_v21 }
  0x43   :  { %1101 = vmatprep.subr.bf16.mxu0 %v1437_v22 }
  0x46   :  { %1103 = vmatpush1.bf16.msra.mxu0 %v1441_v25 }
  0x47   :  { %1121 = vmatprep.subr.bf16.mxu0 %v1415_v4 }
  0xa1   :  { %v159_v41 = vpop.permute.xlu0 %158 }
 0x10c   :  { %v137_v28 = vpop.f32.mrb[0].mxu0 }
 0x10d   :  { %v142_v29 = vadd.f32 %v137_v28, %v65_v27  ;;  %v139_v30 = vpop.f32.mrb[1].mxu0 }
 0x10e   :  { %v143_v33 = vadd.f32 %v139_v30, %v66_v32 }
 0x10f   :  { %v1033_v31 = vmul.f32 -1.442695, %v142_v29  ;;  %v304_v29 = vld [vmem:[#allocation4 + $0x28] sm:$0xff] }
 0x110   :  { %v1034_v39 = vmul.f32 -1.442695, %v143_v33 }
 0x111   :  { %1193 = vpow2.f32 %v1033_v31 }
 0x112   :  { %1195 = vtanh.f32 %v143_v33 }
 0x11b   :  { %v1194_v34 = vpop.eup %1193 }
 0x11c   :  { %v147_v35 = vadd.f32 1.0, %v1194_v34  ;;  %v1196_v36 = vpop.eup %1195 }
 0x11e   :  { %1197 = vrcp.f32 %v147_v35 }
 0x11f   :  { %1199 = vpow2.f32 %v1034_v39 }
 0x128   :  { %v1198_v37 = vpop.eup %1197 }
 0x129   :  { %v162_v38 = vmul.f32 %v1198_v37, %v1196_v36  ;;  %v1200_v40 = vpop.eup %1199  ;;  %v161_v43 = vmul.f32 %v1198_v37, %v159_v41 }
 0x12a   :  { %v154_v42 = vadd.f32 1.0, %v1200_v40 }
 0x12b   :  { %164 = vrot.lane.b32.xlu0 %v162_v38, %s1366_s1 }
 0x12c   :  { %1201 = vrcp.f32 %v154_v42 }
 0x136   :  { %v1202_v46 = vpop.eup %1201 }
 0x19d   :  { %v165_v44 = vpop.permute.xlu0 %164 }
 0x19e   :  { %v167_v45 = vadd.f32 %v165_v44, %v161_v43 }
 0x1a0   :  { %1203 = vtanh.f32 %v167_v45 }
 0x1aa   :  { %v1204_v47 = vpop.eup %1203 }
 0x1ab   :  { %v169_v48 = vmul.f32 %v1204_v47, %v1202_v46 }
 0x1ad   :  { %171 = vrot.lane.b32.xlu1 %v169_v48, %s1366_s1 }
 0x1b1   :  { %176 = vrot.lane.b32.xlu1 %v167_v45, %s1366_s1 }
 0x21f   :  { %v172_v49 = vpop.permute.xlu1 %171 }
 0x220   :  { %174 = vst.msk [vmem:[#allocation2] sm:$0xff] %vm44_vm0, %v172_v49  ;;  %180 = vst.msk [vmem:[#allocation9] sm:$0xff] %vm44_vm0, %v172_v49 }
 0x223   :  { %v177_v50 = vpop.permute.xlu1 %176 }
 0x224   :  { %179 = vst.msk [vmem:[#allocation3] sm:$0xff] %vm44_vm0, %v177_v50  ;;  %v422_v50 = vld [vmem:[#allocation4 + $0x30] sm:$0xff] }
 0x227   :  { %v181_v51 = vld [vmem:[#allocation2] sm:$0xff] }
 0x228   :  { %1035 = vmatmul.mubr.msk.f32.vlgmr.msra.gmra.mrb[0].mxu1 %vm44_vm0, %v181_v51 }
 0x229   :  { %1107 = vmatpush1.bf16.msra.mxu1 %v1417_v8  ;;  %491 = vmatprep.mubr.f32.mxu1 %v1365_v0 }
 0x22a   :  { %1109 = vmatprep.subr.bf16.mxu1 %v1419_v9 }
 0x22b   :  { %v182_v52 = vld [vmem:[#allocation3] sm:$0xff] }
 0x22c   :  { %276 = vrot.lane.b32.xlu0 %v182_v52, %s1366_s1 }
 0x22d   :  { %1111 = vmatpush1.bf16.msra.mxu1 %v1424_v14 }
 0x22e   :  { %1113 = vmatprep.subr.bf16.mxu1 %v1428_v15 }
 0x231   :  { %1115 = vmatpush1.bf16.msra.mxu1 %v1433_v21 }
 0x232   :  { %1117 = vmatprep.subr.bf16.mxu1 %v1437_v22 }
 0x235   :  { %1119 = vmatpush1.bf16.msra.mxu1 %v1441_v25 }
 0x236   :  { %1137 = vmatprep.subr.bf16.mxu1 %v1415_v4 }
 0x29e   :  { %v277_v5 = vpop.permute.xlu0 %276 }
 0x2fb   :  { %v255_v54 = vpop.f32.mrb[0].mxu1 }
 0x2fc   :  { %v260_v55 = vadd.f32 %v255_v54, %v184_v53  ;;  %v257_v56 = vpop.f32.mrb[1].mxu1 }
 0x2fd   :  { %v261_v59 = vadd.f32 %v257_v56, %v185_v58 }
 0x2fe   :  { %v1036_v57 = vmul.f32 -1.442695, %v260_v55  ;;  %v423_v55 = vld [vmem:[#allocation4 + $0x38] sm:$0xff] }
 0x2ff   :  { %v1037_v2 = vmul.f32 -1.442695, %v261_v59 }
 0x300   :  { %1205 = vpow2.f32 %v1036_v57 }
 0x301   :  { %1207 = vtanh.f32 %v261_v59 }
 0x30a   :  { %v1206_v60 = vpop.eup %1205 }
 0x30b   :  { %v265_v61 = vadd.f32 1.0, %v1206_v60  ;;  %v1208_v62 = vpop.eup %1207 }
 0x30d   :  { %1209 = vrcp.f32 %v265_v61 }
 0x30e   :  { %1211 = vpow2.f32 %v1037_v2 }
 0x317   :  { %v1210_v63 = vpop.eup %1209 }
 0x318   :  { %v280_v1 = vmul.f32 %v1210_v63, %v1208_v62  ;;  %v1212_v3 = vpop.eup %1211  ;;  %v279_v7 = vmul.f32 %v1210_v63, %v277_v5 }
 0x319   :  { %v272_v6 = vadd.f32 1.0, %v1212_v3 }
 0x31a   :  { %282 = vrot.lane.b32.xlu1 %v280_v1, %s1366_s1 }
 0x31b   :  { %1213 = vrcp.f32 %v272_v6 }
 0x325   :  { %v1214_v12 = vpop.eup %1213 }
 0x38c   :  { %v283_v10 = vpop.permute.xlu1 %282 }
 0x38d   :  { %v285_v11 = vadd.f32 %v283_v10, %v279_v7 }
 0x38f   :  { %1215 = vtanh.f32 %v285_v11  ;;  %294 = vrot.lane.b32.xlu1 %v285_v11, %s1366_s1 }
 0x399   :  { %v1216_v13 = vpop.eup %1215 }
 0x39a   :  { %v287_v16 = vmul.f32 %v1216_v13, %v1214_v12 }
 0x39c   :  { %289 = vrot.lane.b32.xlu0 %v287_v16, %s1366_s1 }
 0x401   :  { %v295_v17 = vpop.permute.xlu1 %294 }
 0x402   :  { %297 = vst.msk [vmem:[#allocation3] sm:$0xff] %vm44_vm0, %v295_v17  ;;  %v541_v17 = vld [vmem:[#allocation4 + $0x40] sm:$0xff] }
 0x409   :  { %v301_v18 = vld [vmem:[#allocation3] sm:$0xff] }
 0x40a   :  { %395 = vrot.lane.b32.xlu0 %v301_v18, %s1366_s1 }
 0x40e   :  { %v290_v19 = vpop.permute.xlu0 %289 }
 0x40f   :  { %292 = vst.msk [vmem:[#allocation2] sm:$0xff] %vm44_vm0, %v290_v19  ;;  %299 = vst.msk [vmem:[#allocation9 + $0x8] sm:$0xff] %vm44_vm0, %v290_v19 }
 0x416   :  { %v300_v20 = vld [vmem:[#allocation2] sm:$0xff] }
 0x417   :  { %1038 = vmatmul.mubr.msk.f32.vlgmr.msra.gmra.mrb[2].mxu0 %vm44_vm0, %v300_v20 }
 0x418   :  { %1123 = vmatpush1.bf16.msra.mxu0 %v1417_v8  ;;  %610 = vmatprep.mubr.f32.mxu0 %v1365_v0 }
 0x419   :  { %1125 = vmatprep.subr.bf16.mxu0 %v1419_v9 }
 0x41c   :  { %1127 = vmatpush1.bf16.msra.mxu0 %v1424_v14 }
 0x41d   :  { %1129 = vmatprep.subr.bf16.mxu0 %v1428_v15 }
 0x420   :  { %1131 = vmatpush1.bf16.msra.mxu0 %v1433_v21 }
 0x421   :  { %1133 = vmatprep.subr.bf16.mxu0 %v1437_v22 }
 0x424   :  { %1135 = vmatpush1.bf16.msra.mxu0 %v1441_v25 }
 0x425   :  { %1153 = vmatprep.subr.bf16.mxu0 %v1415_v4 }
 0x47c   :  { %v396_v38 = vpop.permute.xlu0 %395 }
 0x4ea   :  { %v374_v24 = vpop.f32.mrb[2].mxu0 }
 0x4eb   :  { %v379_v26 = vadd.f32 %v374_v24, %v303_v23  ;;  %v376_v27 = vpop.f32.mrb[3].mxu0  ;;  %v542_v24 = vld [vmem:[#allocation4 + $0x48] sm:$0xff] }
 0x4ec   :  { %v380_v30 = vadd.f32 %v376_v27, %v304_v29 }
 0x4ed   :  { %v1039_v28 = vmul.f32 -1.442695, %v379_v26 }
 0x4ee   :  { %v1040_v36 = vmul.f32 -1.442695, %v380_v30 }
 0x4ef   :  { %1217 = vpow2.f32 %v1039_v28 }
 0x4f0   :  { %1219 = vtanh.f32 %v380_v30 }
 0x4f9   :  { %v1218_v31 = vpop.eup %1217 }
 0x4fa   :  { %v384_v32 = vadd.f32 1.0, %v1218_v31  ;;  %v1220_v33 = vpop.eup %1219 }
 0x4fc   :  { %1221 = vrcp.f32 %v384_v32 }
 0x4fd   :  { %1223 = vpow2.f32 %v1040_v36 }
 0x506   :  { %v1222_v34 = vpop.eup %1221 }
 0x507   :  { %v399_v35 = vmul.f32 %v1222_v34, %v1220_v33  ;;  %v1224_v37 = vpop.eup %1223  ;;  %v398_v40 = vmul.f32 %v1222_v34, %v396_v38 }
 0x508   :  { %v391_v39 = vadd.f32 1.0, %v1224_v37 }
 0x509   :  { %401 = vrot.lane.b32.xlu1 %v399_v35, %s1366_s1 }
 0x50a   :  { %1225 = vrcp.f32 %v391_v39 }
 0x514   :  { %v1226_v43 = vpop.eup %1225 }
 0x57b   :  { %v402_v41 = vpop.permute.xlu1 %401 }
 0x57c   :  { %v404_v42 = vadd.f32 %v402_v41, %v398_v40 }
 0x57e   :  { %1227 = vtanh.f32 %v404_v42  ;;  %413 = vrot.lane.b32.xlu1 %v404_v42, %s1366_s1 }
 0x588   :  { %v1228_v44 = vpop.eup %1227 }
 0x589   :  { %v406_v45 = vmul.f32 %v1228_v44, %v1226_v43 }
 0x58b   :  { %408 = vrot.lane.b32.xlu0 %v406_v45, %s1366_s1 }
 0x5f0   :  { %v414_v46 = vpop.permute.xlu1 %413 }
 0x5f1   :  { %416 = vst.msk [vmem:[#allocation3] sm:$0xff] %vm44_vm0, %v414_v46  ;;  %v660_v46 = vld [vmem:[#allocation4 + $0x50] sm:$0xff] }
 0x5f8   :  { %v420_v47 = vld [vmem:[#allocation3] sm:$0xff] }
 0x5f9   :  { %514 = vrot.lane.b32.xlu0 %v420_v47, %s1366_s1 }
 0x5fd   :  { %v409_v48 = vpop.permute.xlu0 %408 }
 0x5fe   :  { %411 = vst.msk [vmem:[#allocation2] sm:$0xff] %vm44_vm0, %v409_v48  ;;  %418 = vst.msk [vmem:[#allocation9 + $0x10] sm:$0xff] %vm44_vm0, %v409_v48 }
 0x605   :  { %v419_v49 = vld [vmem:[#allocation2] sm:$0xff] }
 0x606   :  { %1041 = vmatmul.mubr.msk.f32.vlgmr.msra.gmra.mrb[2].mxu1 %vm44_vm0, %v419_v49 }
 0x607   :  { %1139 = vmatpush1.bf16.msra.mxu1 %v1417_v8  ;;  %729 = vmatprep.mubr.f32.mxu1 %v1365_v0 }
 0x608   :  { %1141 = vmatprep.subr.bf16.mxu1 %v1419_v9 }
 0x60b   :  { %1143 = vmatpush1.bf16.msra.mxu1 %v1424_v14 }
 0x60c   :  { %1145 = vmatprep.subr.bf16.mxu1 %v1428_v15 }
 0x60f   :  { %1147 = vmatpush1.bf16.msra.mxu1 %v1433_v21 }
 0x610   :  { %1149 = vmatprep.subr.bf16.mxu1 %v1437_v22 }
 0x613   :  { %1151 = vmatpush1.bf16.msra.mxu1 %v1441_v25 }
 0x614   :  { %1169 = vmatprep.subr.bf16.mxu1 %v1415_v4 }
 0x66b   :  { %v515_v63 = vpop.permute.xlu0 %514 }
 0x6d9   :  { %v493_v51 = vpop.f32.mrb[2].mxu1 }
 0x6da   :  { %v498_v52 = vadd.f32 %v493_v51, %v422_v50  ;;  %v495_v53 = vpop.f32.mrb[3].mxu1 }
 0x6db   :  { %v499_v56 = vadd.f32 %v495_v53, %v423_v55 }
 0x6dc   :  { %v1042_v54 = vmul.f32 -1.442695, %v498_v52 }
 0x6dd   :  { %v1043_v62 = vmul.f32 -1.442695, %v499_v56 }
 0x6de   :  { %1229 = vpow2.f32 %v1042_v54 }
 0x6df   :  { %1231 = vtanh.f32 %v499_v56 }
 0x6e8   :  { %v1230_v57 = vpop.eup %1229 }
 0x6e9   :  { %v503_v58 = vadd.f32 1.0, %v1230_v57  ;;  %v1232_v59 = vpop.eup %1231 }
 0x6eb   :  { %1233 = vrcp.f32 %v503_v58 }
 0x6ec   :  { %1235 = vpow2.f32 %v1043_v62 }
 0x6f5   :  { %v1234_v60 = vpop.eup %1233 }
 0x6f6   :  { %v518_v61 = vmul.f32 %v1234_v60, %v1232_v59  ;;  %v1236_v4 = vpop.eup %1235  ;;  %v517_v2 = vmul.f32 %v1234_v60, %v515_v63  ;;  %v779_v63 = vld [vmem:[#allocation4 + $0x60] sm:$0xff] }
 0x6f7   :  { %v510_v1 = vadd.f32 1.0, %v1236_v4 }
 0x6f8   :  { %520 = vrot.lane.b32.xlu1 %v518_v61, %s1366_s1 }
 0x6f9   :  { %1237 = vrcp.f32 %v510_v1 }
 0x703   :  { %v1238_v6 = vpop.eup %1237 }
 0x76a   :  { %v521_v3 = vpop.permute.xlu1 %520 }
 0x76b   :  { %v523_v5 = vadd.f32 %v521_v3, %v517_v2 }
 0x76d   :  { %1239 = vtanh.f32 %v523_v5  ;;  %532 = vrot.lane.b32.xlu1 %v523_v5, %s1366_s1 }
 0x777   :  { %v1240_v7 = vpop.eup %1239 }
 0x778   :  { %v525_v10 = vmul.f32 %v1240_v7, %v1238_v6  ;;  %v780_v6 = vld [vmem:[#allocation4 + $0x68] sm:$0xff] }
 0x77a   :  { %527 = vrot.lane.b32.xlu0 %v525_v10, %s1366_s1 }
 0x7df   :  { %v533_v11 = vpop.permute.xlu1 %532 }
 0x7e0   :  { %535 = vst.msk [vmem:[#allocation3] sm:$0xff] %vm44_vm0, %v533_v11 }
 0x7e7   :  { %v539_v12 = vld [vmem:[#allocation3] sm:$0xff] }
 0x7e8   :  { %633 = vrot.lane.b32.xlu0 %v539_v12, %s1366_s1 }
 0x7ec   :  { %v528_v13 = vpop.permute.xlu0 %527 }
 0x7ed   :  { %530 = vst.msk [vmem:[#allocation2] sm:$0xff] %vm44_vm0, %v528_v13  ;;  %537 = vst.msk [vmem:[#allocation9 + $0x18] sm:$0xff] %vm44_vm0, %v528_v13 }
 0x7f4   :  { %v538_v16 = vld [vmem:[#allocation2] sm:$0xff] }
 0x7f5   :  { %1044 = vmatmul.mubr.msk.f32.vlgmr.msra.gmra.mrb[4].mxu0 %vm44_vm0, %v538_v16 }
 0x7f6   :  { %1155 = vmatpush1.bf16.msra.mxu0 %v1417_v8  ;;  %848 = vmatprep.mubr.f32.mxu0 %v1365_v0 }
 0x7f7   :  { %1157 = vmatprep.subr.bf16.mxu0 %v1419_v9 }
 0x7fa   :  { %1159 = vmatpush1.bf16.msra.mxu0 %v1424_v14 }
 0x7fb   :  { %1161 = vmatprep.subr.bf16.mxu0 %v1428_v15 }
 0x7fe   :  { %1163 = vmatpush1.bf16.msra.mxu0 %v1433_v21 }
 0x7ff   :  { %1165 = vmatprep.subr.bf16.mxu0 %v1437_v22 }
 0x802   :  { %1167 = vmatpush1.bf16.msra.mxu0 %v1441_v25 }
 0x85a   :  { %v634_v34 = vpop.permute.xlu0 %633 }
 0x8c8   :  { %v612_v18 = vpop.f32.mrb[4].mxu0 }
 0x8c9   :  { %v617_v19 = vadd.f32 %v612_v18, %v541_v17  ;;  %v614_v20 = vpop.f32.mrb[5].mxu0 }
 0x8ca   :  { %v618_v26 = vadd.f32 %v614_v20, %v542_v24 }
 0x8cb   :  { %v1045_v23 = vmul.f32 -1.442695, %v617_v19 }
 0x8cc   :  { %v1046_v32 = vmul.f32 -1.442695, %v618_v26 }
 0x8cd   :  { %1241 = vpow2.f32 %v1045_v23 }
 0x8ce   :  { %1243 = vtanh.f32 %v618_v26 }
 0x8d7   :  { %v1242_v27 = vpop.eup %1241 }
 0x8d8   :  { %v622_v28 = vadd.f32 1.0, %v1242_v27  ;;  %v1244_v29 = vpop.eup %1243 }
 0x8da   :  { %1245 = vrcp.f32 %v622_v28 }
 0x8db   :  { %1247 = vpow2.f32 %v1046_v32 }
 0x8e4   :  { %v1246_v30 = vpop.eup %1245 }
 0x8e5   :  { %v637_v31 = vmul.f32 %v1246_v30, %v1244_v29  ;;  %v1248_v33 = vpop.eup %1247  ;;  %v636_v36 = vmul.f32 %v1246_v30, %v634_v34  ;;  %v898_v34 = vld [vmem:[#allocation4 + $0x70] sm:$0xff] }
 0x8e6   :  { %v629_v35 = vadd.f32 1.0, %v1248_v33 }
 0x8e7   :  { %639 = vrot.lane.b32.xlu1 %v637_v31, %s1366_s1 }
 0x8e8   :  { %1249 = vrcp.f32 %v629_v35 }
 0x8f2   :  { %v1250_v39 = vpop.eup %1249 }
 0x959   :  { %v640_v37 = vpop.permute.xlu1 %639 }
 0x95a   :  { %v642_v38 = vadd.f32 %v640_v37, %v636_v36 }
 0x95c   :  { %1251 = vtanh.f32 %v642_v38  ;;  %651 = vrot.lane.b32.xlu1 %v642_v38, %s1366_s1 }
 0x966   :  { %v1252_v40 = vpop.eup %1251 }
 0x967   :  { %v644_v41 = vmul.f32 %v1252_v40, %v1250_v39  ;;  %v899_v39 = vld [vmem:[#allocation4 + $0x78] sm:$0xff] }
 0x969   :  { %646 = vrot.lane.b32.xlu0 %v644_v41, %s1366_s1 }
 0x9ce   :  { %v652_v42 = vpop.permute.xlu1 %651 }
 0x9cf   :  { %654 = vst.msk [vmem:[#allocation3] sm:$0xff] %vm44_vm0, %v652_v42 }
 0x9d6   :  { %v658_v43 = vld [vmem:[#allocation3] sm:$0xff] }
 0x9d7   :  { %752 = vrot.lane.b32.xlu0 %v658_v43, %s1366_s1 }
 0x9db   :  { %v647_v44 = vpop.permute.xlu0 %646 }
 0x9dc   :  { %649 = vst.msk [vmem:[#allocation2] sm:$0xff] %vm44_vm0, %v647_v44  ;;  %656 = vst.msk [vmem:[#allocation9 + $0x20] sm:$0xff] %vm44_vm0, %v647_v44 }
 0x9e3   :  { %v657_v45 = vld [vmem:[#allocation2] sm:$0xff] }
 0x9e4   :  { %1047 = vmatmul.mubr.msk.f32.vlgmr.msra.gmra.mrb[4].mxu1 %vm44_vm0, %v657_v45 }
 0x9e5   :  { %1171 = vmatpush1.bf16.msra.mxu1 %v1417_v8  ;;  %967 = vmatprep.mubr.f32.mxu1 %v1365_v0  ;;  %v661_v8 = vld [vmem:[#allocation4 + $0x58] sm:$0xff] }
 0x9e6   :  { %1173 = vmatprep.subr.bf16.mxu1 %v1419_v9 }
 0x9e9   :  { %1175 = vmatpush1.bf16.msra.mxu1 %v1424_v14 }
 0x9ea   :  { %1177 = vmatprep.subr.bf16.mxu1 %v1428_v15 }
 0x9ed   :  { %1179 = vmatpush1.bf16.msra.mxu1 %v1433_v21 }
 0x9ee   :  { %1181 = vmatprep.subr.bf16.mxu1 %v1437_v22 }
 0x9f1   :  { %1183 = vmatpush1.bf16.msra.mxu1 %v1441_v25 }
 0xa49   :  { %v753_v25 = vpop.permute.xlu0 %752 }
 0xab7   :  { %v731_v47 = vpop.f32.mrb[4].mxu1 }
 0xab8   :  { %v736_v48 = vadd.f32 %v731_v47, %v660_v46  ;;  %v733_v49 = vpop.f32.mrb[5].mxu1 }
 0xab9   :  { %v737_v0 = vadd.f32 %v733_v49, %v661_v8 }
 0xaba   :  { %v1048_v50 = vmul.f32 -1.442695, %v736_v48 }
 0xabb   :  { %v1049_v21 = vmul.f32 -1.442695, %v737_v0 }
 0xabc   :  { %1253 = vpow2.f32 %v1048_v50 }
 0xabd   :  { %1255 = vtanh.f32 %v737_v0 }
 0xac6   :  { %v1254_v51 = vpop.eup %1253 }
 0xac7   :  { %v741_v9 = vadd.f32 1.0, %v1254_v51  ;;  %v1256_v14 = vpop.eup %1255 }
 0xac9   :  { %1257 = vrcp.f32 %v741_v9 }
 0xaca   :  { %1259 = vpow2.f32 %v1049_v21 }
 0xad3   :  { %v1258_v15 = vpop.eup %1257 }
 0xad4   :  { %v756_v52 = vmul.f32 %v1258_v15, %v1256_v14  ;;  %v1260_v22 = vpop.eup %1259  ;;  %v755_v54 = vmul.f32 %v1258_v15, %v753_v25 }
 0xad5   :  { %v748_v53 = vadd.f32 1.0, %v1260_v22 }
 0xad6   :  { %758 = vrot.lane.b32.xlu1 %v756_v52, %s1366_s1 }
 0xad7   :  { %1261 = vrcp.f32 %v748_v53 }
 0xae1   :  { %v1262_v57 = vpop.eup %1261 }
 0xb48   :  { %v759_v55 = vpop.permute.xlu1 %758 }
 0xb49   :  { %v761_v56 = vadd.f32 %v759_v55, %v755_v54 }
 0xb4b   :  { %1263 = vtanh.f32 %v761_v56  ;;  %770 = vrot.lane.b32.xlu1 %v761_v56, %s1366_s1 }
 0xb55   :  { %v1264_v58 = vpop.eup %1263 }
 0xb56   :  { %v763_v59 = vmul.f32 %v1264_v58, %v1262_v57 }
 0xb58   :  { %765 = vrot.lane.b32.xlu0 %v763_v59, %s1366_s1 }
 0xbbd   :  { %v771_v60 = vpop.permute.xlu1 %770 }
 0xbbe   :  { %773 = vst.msk [vmem:[#allocation3] sm:$0xff] %vm44_vm0, %v771_v60 }
 0xbc5   :  { %v777_v61 = vld [vmem:[#allocation3] sm:$0xff] }
 0xbc6   :  { %871 = vrot.lane.b32.xlu0 %v777_v61, %s1366_s1 }
 0xbca   :  { %v766_v62 = vpop.permute.xlu0 %765 }
 0xbcb   :  { %768 = vst.msk [vmem:[#allocation2] sm:$0xff] %vm44_vm0, %v766_v62  ;;  %775 = vst.msk [vmem:[#allocation9 + $0x28] sm:$0xff] %vm44_vm0, %v766_v62 }
 0xbd2   :  { %v776_v4 = vld [vmem:[#allocation2] sm:$0xff] }
 0xbd3   :  { %1050 = vmatmul.mubr.msk.f32.vlgmr.msra.gmra.mrb[6].mxu0 %vm44_vm0, %v776_v4 }
 0xc38   :  { %v872_v19 = vpop.permute.xlu0 %871 }
 0xca6   :  { %v850_v1 = vpop.f32.mrb[6].mxu0 }
 0xca7   :  { %v855_v2 = vadd.f32 %v850_v1, %v779_v63  ;;  %v852_v3 = vpop.f32.mrb[7].mxu0 }
 0xca8   :  { %v856_v7 = vadd.f32 %v852_v3, %v780_v6 }
 0xca9   :  { %v1051_v5 = vmul.f32 -1.442695, %v855_v2 }
 0xcaa   :  { %v1052_v17 = vmul.f32 -1.442695, %v856_v7 }
 0xcab   :  { %1265 = vpow2.f32 %v1051_v5 }
 0xcac   :  { %1267 = vtanh.f32 %v856_v7 }
 0xcb5   :  { %v1266_v10 = vpop.eup %1265 }
 0xcb6   :  { %v860_v11 = vadd.f32 1.0, %v1266_v10  ;;  %v1268_v12 = vpop.eup %1267 }
 0xcb8   :  { %1269 = vrcp.f32 %v860_v11 }
 0xcb9   :  { %1271 = vpow2.f32 %v1052_v17 }
 0xcc2   :  { %v1270_v13 = vpop.eup %1269 }
 0xcc3   :  { %v875_v16 = vmul.f32 %v1270_v13, %v1268_v12  ;;  %v1272_v18 = vpop.eup %1271  ;;  %v874_v23 = vmul.f32 %v1270_v13, %v872_v19 }
 0xcc4   :  { %v867_v20 = vadd.f32 1.0, %v1272_v18 }
 0xcc5   :  { %877 = vrot.lane.b32.xlu1 %v875_v16, %s1366_s1 }
 0xcc6   :  { %1273 = vrcp.f32 %v867_v20 }
 0xcd0   :  { %v1274_v27 = vpop.eup %1273 }
 0xd37   :  { %v878_v24 = vpop.permute.xlu1 %877 }
 0xd38   :  { %v880_v26 = vadd.f32 %v878_v24, %v874_v23 }
 0xd3a   :  { %1275 = vtanh.f32 %v880_v26  ;;  %889 = vrot.lane.b32.xlu1 %v880_v26, %s1366_s1 }
 0xd44   :  { %v1276_v28 = vpop.eup %1275 }
 0xd45   :  { %v882_v29 = vmul.f32 %v1276_v28, %v1274_v27 }
 0xd47   :  { %884 = vrot.lane.b32.xlu0 %v882_v29, %s1366_s1 }
 0xdac   :  { %v890_v30 = vpop.permute.xlu1 %889 }
 0xdad   :  { %892 = vst.msk [vmem:[#allocation3] sm:$0xff] %vm44_vm0, %v890_v30 }
 0xdb4   :  { %v896_v31 = vld [vmem:[#allocation3] sm:$0xff] }
 0xdb5   :  { %990 = vrot.lane.b32.xlu0 %v896_v31, %s1366_s1 }
 0xdb9   :  { %v885_v32 = vpop.permute.xlu0 %884 }
 0xdba   :  { %887 = vst.msk [vmem:[#allocation2] sm:$0xff] %vm44_vm0, %v885_v32  ;;  %894 = vst.msk [vmem:[#allocation9 + $0x30] sm:$0xff] %vm44_vm0, %v885_v32 }
 0xdc1   :  { %v895_v33 = vld [vmem:[#allocation2] sm:$0xff] }
 0xdc2   :  { %1053 = vmatmul.mubr.msk.f32.vlgmr.msra.gmra.mrb[6].mxu1 %vm44_vm0, %v895_v33 }
 0xe27   :  { %v991_v48 = vpop.permute.xlu0 %990 }
 0xe95   :  { %v969_v35 = vpop.f32.mrb[6].mxu1 }
 0xe96   :  { %v974_v36 = vadd.f32 %v969_v35, %v898_v34  ;;  %v971_v37 = vpop.f32.mrb[7].mxu1 }
 0xe97   :  { %v975_v40 = vadd.f32 %v971_v37, %v899_v39 }
 0xe98   :  { %v1054_v38 = vmul.f32 -1.442695, %v974_v36 }
 0xe99   :  { %v1055_v46 = vmul.f32 -1.442695, %v975_v40 }
 0xe9a   :  { %1277 = vpow2.f32 %v1054_v38 }
 0xe9b   :  { %1279 = vtanh.f32 %v975_v40 }
 0xea4   :  { %v1278_v41 = vpop.eup %1277 }
 0xea5   :  { %v979_v42 = vadd.f32 1.0, %v1278_v41  ;;  %v1280_v43 = vpop.eup %1279 }
 0xea7   :  { %1281 = vrcp.f32 %v979_v42 }
 0xea8   :  { %1283 = vpow2.f32 %v1055_v46 }
 0xeb1   :  { %v1282_v44 = vpop.eup %1281 }
 0xeb2   :  { %v994_v45 = vmul.f32 %v1282_v44, %v1280_v43  ;;  %v1284_v47 = vpop.eup %1283  ;;  %v993_v50 = vmul.f32 %v1282_v44, %v991_v48 }
 0xeb3   :  { %v986_v49 = vadd.f32 1.0, %v1284_v47 }
 0xeb4   :  { %996 = vrot.lane.b32.xlu1 %v994_v45, %s1366_s1 }
 0xeb5   :  { %1285 = vrcp.f32 %v986_v49 }
 0xebf   :  { %v1286_v51 = vpop.eup %1285 }
 0xf26   :  { %v997_v8 = vpop.permute.xlu1 %996 }
 0xf27   :  { %v999_v0 = vadd.f32 %v997_v8, %v993_v50 }
 0xf29   :  { %1287 = vtanh.f32 %v999_v0  ;;  %1008 = vrot.lane.b32.xlu1 %v999_v0, %s1366_s1 }
 0xf33   :  { %v1288_v9 = vpop.eup %1287 }
 0xf34   :  { %v1001_v14 = vmul.f32 %v1288_v9, %v1286_v51 }
 0xf36   :  { %1003 = vrot.lane.b32.xlu0 %v1001_v14, %s1366_s1 }
 0xf9b   :  { %v1009_v15 = vpop.permute.xlu1 %1008 }
 0xf9c   :  { %1011 = vst.msk [vmem:[#allocation3] sm:$0xff] %vm44_vm0, %v1009_v15 }
 0xfa8   :  { %v1004_v52 = vpop.permute.xlu0 %1003 }
 0xfa9   :  { %1006 = vst.msk [vmem:[#allocation2] sm:$0xff] %vm44_vm0, %v1004_v52  ;;  %1013 = vst.msk [vmem:[#allocation9 + $0x38] sm:$0xff] %vm44_vm0, %v1004_v52 }
 0xfaa   :  { %1344 = shalt.err (!%p1341_p6)
}
 0xfab   :  { %s1345_s11 = scalar_lea.hbm %s1579_s2, 1024 }
 0xfac   :  { %p1346_p7 = scmp.ne.s32.totalorder %s1579_s2, %s1345_s11  ;;  %p1349_p8 = scmp.lt.u32.totalorder %s1345_s11, %s1579_s2 }
 0xfae   :  { %p1351_p9 = pnand %p1349_p8, %p1346_p7 }
 0xfb0   :  { %1354 = shalt.err (!%p1351_p9)
}
 0xfb1   :  { %s1368_s16 = smov 128   ;;  %s1369_s17 = smov 8  }
 0xfb2   :  { %1025 = dma.vmem_to_hbm [thread:$0]  %s1020_s7, 1024, %s1579_s2, [#allocation6], %s1368_s16, %s1368_s16, %s1369_s17  }
 0xfb3   :  { %1359 = dma.done.wait [#allocation6], 1024  }
 0xfb4   :  { %1360 = vsyncadd [#allocation6], 4294966272 }
 0xfb5   :  { %1029 = vsyncpa [#allocation5], 1 }
 0xfb6   :  { %1030 = vsyncpa [#allocation8], 1 }
 0xfb7   :  { %1031 = vsyncpa [#allocation6], 1 }

</bundles_post_ra>
